<compile_context>
chip_gen: v7x
topology: tpu7x:2x2x1
jax: 0.10.0
libtpu: 0.0.40
codegen_flags: <defaults>
</compile_context>

<pallas_src>
import functools

import jax
import jax.numpy as jnp
from jax.experimental import pallas as pl
from jax.experimental.pallas import tpu as pltpu

_VMEM_LIMIT = 32 * 1024 * 1024  # explicit scoped-VMEM (covers v5e's 16MiB default)


def _round_up(x, m):
    return (x + m - 1) // m * m


# ----------------------------------------------------------------------------
# Tiled linear: y = x @ w + b (optional ReLU)
# ----------------------------------------------------------------------------
def _linear_kernel(x_ref, w_ref, b_ref, o_ref, acc_ref, *, activation):
    @pl.when(pl.program_id(2) == 0)
    def _():
        acc_ref[...] = jnp.zeros_like(acc_ref)

    acc_ref[...] += jnp.dot(x_ref[...], w_ref[...],
                            preferred_element_type=jnp.float32)

    @pl.when(pl.program_id(2) == pl.num_programs(2) - 1)
    def _():
        y = acc_ref[...] + b_ref[...]
        if activation == "relu":
            y = jnp.maximum(y, 0.0)
        o_ref[...] = y.astype(o_ref.dtype)


def pallas_linear(x, w, b, activation=None):
    """y = x @ w + b.  x:(M,K), w:(K,N) (== PyTorch weight.T), b:(N,)."""
    M, K = x.shape
    N = w.shape[1]
    # Target tiles (kept modest so double-buffered inputs fit v7x's 64MiB VMEM).
    TM, TN, TK = 256, 256, 512
    Mp = _round_up(M, 8)
    Np = _round_up(N, 128)
    Kp = _round_up(K, 128)
    tm, tn, tk = min(TM, Mp), min(TN, Np), min(TK, Kp)
    Mp, Np, Kp = _round_up(Mp, tm), _round_up(Np, tn), _round_up(Kp, tk)

    xp = jnp.pad(x, ((0, Mp - M), (0, Kp - K))) if (Mp != M or Kp != K) else x
    wp = jnp.pad(w, ((0, Kp - K), (0, Np - N))) if (Kp != K or Np != N) else w
    bp = jnp.pad(b, (0, Np - N)) if Np != N else b

    out = pl.pallas_call(
        functools.partial(_linear_kernel, activation=activation),
        out_shape=jax.ShapeDtypeStruct((Mp, Np), jnp.float32),
        grid=(Mp // tm, Np // tn, Kp // tk),
        in_specs=[
            pl.BlockSpec((tm, tk), lambda i, j, k: (i, k)),
            pl.BlockSpec((tk, tn), lambda i, j, k: (k, j)),
            pl.BlockSpec((1, tn), lambda i, j, k: (0, j)),
        ],
        out_specs=pl.BlockSpec((tm, tn), lambda i, j, k: (i, j)),
        scratch_shapes=[pltpu.VMEM((tm, tn), jnp.float32)],
        compiler_params=pltpu.CompilerParams(
            dimension_semantics=("parallel", "parallel", "arbitrary"),
            vmem_limit_bytes=_VMEM_LIMIT),
    )(xp, wp, bp.reshape(1, Np))
    if Mp != M or Np != N:
        out = out[:M, :N]
    return out


# ----------------------------------------------------------------------------
# Fused out-projection + residual + LayerNorm:  LN(x @ w + b + res)
# ----------------------------------------------------------------------------
def _linear_res_ln_kernel(x_ref, w_ref, b_ref, r_ref, g_ref, bb_ref, o_ref, *, eps):
    y = jnp.dot(x_ref[...], w_ref[...], preferred_element_type=jnp.float32)
    y = y + b_ref[...] + r_ref[...]
    mu = jnp.mean(y, axis=-1, keepdims=True)
    var = jnp.mean(jnp.square(y - mu), axis=-1, keepdims=True)
    yn = (y - mu) * jax.lax.rsqrt(var + eps)
    o_ref[...] = (yn * g_ref[...] + bb_ref[...]).astype(o_ref.dtype)


def pallas_linear_residual_ln(x, w, b, res, gamma, beta, eps=1e-5):
    M, K = x.shape
    E = w.shape[1]
    Mp = _round_up(M, 8)
    tm = min(256, Mp)
    Mp = _round_up(Mp, tm)
    pad_m = Mp - M
    xp = jnp.pad(x, ((0, pad_m), (0, 0))) if pad_m else x
    rp = jnp.pad(res, ((0, pad_m), (0, 0))) if pad_m else res
    out = pl.pallas_call(
        functools.partial(_linear_res_ln_kernel, eps=eps),
        out_shape=jax.ShapeDtypeStruct((Mp, E), jnp.float32),
        grid=(Mp // tm,),
        in_specs=[
            pl.BlockSpec((tm, K), lambda i: (i, 0)),
            pl.BlockSpec((K, E), lambda i: (0, 0)),
            pl.BlockSpec((1, E), lambda i: (0, 0)),
            pl.BlockSpec((tm, E), lambda i: (i, 0)),
            pl.BlockSpec((1, E), lambda i: (0, 0)),
            pl.BlockSpec((1, E), lambda i: (0, 0)),
        ],
        out_specs=pl.BlockSpec((tm, E), lambda i: (i, 0)),
        compiler_params=pltpu.CompilerParams(
            dimension_semantics=("parallel",),
            vmem_limit_bytes=_VMEM_LIMIT),
    )(xp, w, b.reshape(1, E), rp, gamma.reshape(1, E), beta.reshape(1, E))
    return out[:M] if pad_m else out


# ----------------------------------------------------------------------------
# Fused FFN: LN( relu(x @ w1 + b1) @ w2 + b2 + x )   (intermediate stays in VMEM)
# ----------------------------------------------------------------------------
def _ffn_res_ln_kernel(x_ref, w1_ref, b1_ref, w2_ref, b2_ref, g_ref, bb_ref,
                       o_ref, *, eps):
    x = x_ref[...]
    h = jnp.dot(x, w1_ref[...], preferred_element_type=jnp.float32) + b1_ref[...]
    h = jnp.maximum(h, 0.0)
    y = jnp.dot(h, w2_ref[...], preferred_element_type=jnp.float32) + b2_ref[...]
    y = y + x                                   # residual (FFN input)
    mu = jnp.mean(y, axis=-1, keepdims=True)
    var = jnp.mean(jnp.square(y - mu), axis=-1, keepdims=True)
    yn = (y - mu) * jax.lax.rsqrt(var + eps)
    o_ref[...] = (yn * g_ref[...] + bb_ref[...]).astype(o_ref.dtype)


def pallas_ffn_residual_ln(x, w1, b1, w2, b2, gamma, beta, eps=1e-5):
    M, E = x.shape
    FF = w1.shape[1]
    Mp = _round_up(M, 8)
    tm = min(256, Mp)
    Mp = _round_up(Mp, tm)
    pad_m = Mp - M
    xp = jnp.pad(x, ((0, pad_m), (0, 0))) if pad_m else x
    out = pl.pallas_call(
        functools.partial(_ffn_res_ln_kernel, eps=eps),
        out_shape=jax.ShapeDtypeStruct((Mp, E), jnp.float32),
        grid=(Mp // tm,),
        in_specs=[
            pl.BlockSpec((tm, E), lambda i: (i, 0)),
            pl.BlockSpec((E, FF), lambda i: (0, 0)),
            pl.BlockSpec((1, FF), lambda i: (0, 0)),
            pl.BlockSpec((FF, E), lambda i: (0, 0)),
            pl.BlockSpec((1, E), lambda i: (0, 0)),
            pl.BlockSpec((1, E), lambda i: (0, 0)),
            pl.BlockSpec((1, E), lambda i: (0, 0)),
        ],
        out_specs=pl.BlockSpec((tm, E), lambda i: (i, 0)),
        compiler_params=pltpu.CompilerParams(
            dimension_semantics=("parallel",),
            vmem_limit_bytes=_VMEM_LIMIT),
    )(xp, w1, b1.reshape(1, FF), w2, b2.reshape(1, E),
      gamma.reshape(1, E), beta.reshape(1, E))
    return out[:M] if pad_m else out


# ----------------------------------------------------------------------------
# Attention core: softmax(QK^T / sqrt(d)) V, all heads batched per grid step
# ----------------------------------------------------------------------------
def _attn_kernel(q_ref, k_ref, v_ref, o_ref, *, scale):
    q = q_ref[...]                               # (H, S, D)
    k = k_ref[...]
    v = v_ref[...]
    s = jnp.einsum("hqd,hkd->hqk", q, k,
                   preferred_element_type=jnp.float32) * scale
    m = jnp.max(s, axis=-1, keepdims=True)
    e = jnp.exp(s - m)
    denom = jnp.sum(e, axis=-1, keepdims=True)
    p = e * pl.reciprocal(denom, approx=True)    # EUP reciprocal instead of divide
    o = jnp.einsum("hqk,hkd->hqd", p, v, preferred_element_type=jnp.float32)
    o_ref[...] = o.astype(o_ref.dtype)


def pallas_attention(q, k, v):
    """softmax(QK^T/sqrt(d)) V for Q,K,V of shape (B, H, S, d)."""
    B, H, S, D = q.shape
    scale = 1.0 / (D ** 0.5)
    spec = pl.BlockSpec((None, H, S, D), lambda b: (b, 0, 0, 0))
    return pl.pallas_call(
        functools.partial(_attn_kernel, scale=scale),
        out_shape=jax.ShapeDtypeStruct((B, H, S, D), jnp.float32),
        grid=(B,),
        in_specs=[spec, spec, spec],
        out_specs=spec,
        compiler_params=pltpu.CompilerParams(
            dimension_semantics=("parallel",)),
    )(q, k, v)


# ----------------------------------------------------------------------------
# Final LayerNorm (CLS rows only) fused with classifier, lane-dense output
# ----------------------------------------------------------------------------
def _ln_classifier_kernel(x_ref, g_ref, b_ref, w_ref, cb_ref, o_ref, *, eps):
    x = x_ref[...]
    mu = jnp.mean(x, axis=-1, keepdims=True)
    var = jnp.mean(jnp.square(x - mu), axis=-1, keepdims=True)
    xn = (x - mu) * jax.lax.rsqrt(var + eps)
    xn = xn * g_ref[...] + b_ref[...]
    y = jnp.dot(xn, w_ref[...], preferred_element_type=jnp.float32) + cb_ref[...]
    o_ref[...] = y.astype(o_ref.dtype)


def pallas_final_ln_classifier(x, gamma, beta, w, b, eps=1e-5):
    B, E = x.shape
    N = w.shape[1]
    Np = _round_up(N, 128)                       # lane-dense store, slice after
    wp = jnp.pad(w, ((0, 0), (0, Np - N))) if Np != N else w
    bp = jnp.pad(b, (0, Np - N)) if Np != N else b
    out = pl.pallas_call(
        functools.partial(_ln_classifier_kernel, eps=eps),
        out_shape=jax.ShapeDtypeStruct((B, Np), jnp.float32),
        grid=(1,),
        in_specs=[
            pl.BlockSpec((B, E), lambda i: (0, 0)),
            pl.BlockSpec((1, E), lambda i: (0, 0)),
            pl.BlockSpec((1, E), lambda i: (0, 0)),
            pl.BlockSpec((E, Np), lambda i: (0, 0)),
            pl.BlockSpec((1, Np), lambda i: (0, 0)),
        ],
        out_specs=pl.BlockSpec((B, Np), lambda i: (0, 0)),
    )(x, gamma.reshape(1, E), beta.reshape(1, E), wp, bp.reshape(1, Np))
    return out[:, :N]


# ----------------------------------------------------------------------------
# Model (glue in plain JAX, compute in the kernels above)
# ----------------------------------------------------------------------------
def init_params(key, *, C, P, EMB, S, LAYERS, FF_MULT, NUM_CLASSES):
    keys = iter(jax.random.split(key, 64))

    def nrm(shape, scale=0.02):
        return jax.random.normal(next(keys), shape, jnp.float32) * scale

    FF = FF_MULT * EMB
    params = {
        "patch_w": nrm((EMB, C, P, P)),          # Conv2d weight layout (out,in,kh,kw)
        "patch_b": nrm((EMB,), 1e-6),
        "cls": nrm((1, 1, EMB)),
        "pos": nrm((1, S, EMB)),
        "final_ln_g": jnp.ones((EMB,), jnp.float32),
        "final_ln_b": jnp.zeros((EMB,), jnp.float32),
        "cls_w": nrm((EMB, NUM_CLASSES)),        # stored as (in, out) == W.T
        "cls_b": jnp.zeros((NUM_CLASSES,), jnp.float32),
        "blocks": [],
    }
    for _ in range(LAYERS):
        params["blocks"].append({
            "wq": nrm((EMB, EMB)), "bq": nrm((EMB,)),
            "wk": nrm((EMB, EMB)), "bk": nrm((EMB,)),
            "wv": nrm((EMB, EMB)), "bv": nrm((EMB,)),
            "wo": nrm((EMB, EMB)), "bo": nrm((EMB,)),
            "ln1_g": jnp.ones((EMB,), jnp.float32),
            "ln1_b": jnp.zeros((EMB,), jnp.float32),
            "w1": nrm((EMB, FF)), "b1": nrm((FF,)),
            "w2": nrm((FF, EMB)), "b2": nrm((EMB,)),
            "ln2_g": jnp.ones((EMB,), jnp.float32),
            "ln2_b": jnp.zeros((EMB,), jnp.float32),
        })
    return params


def transformer_block(x_seq, bp, n_heads):
    B, S, E = x_seq.shape
    hd = E // n_heads
    x2 = x_seq.reshape(B * S, E)

    # Fused Q/K/V projection: one (E, 3E) matmul instead of three launches.
    wqkv = jnp.concatenate([bp["wq"], bp["wk"], bp["wv"]], axis=1)
    bqkv = jnp.concatenate([bp["bq"], bp["bk"], bp["bv"]])
    qkv = pallas_linear(x2, wqkv, bqkv)                       # (B*S, 3E)
    q, k, v = jnp.split(qkv, 3, axis=-1)

    split = lambda t: t.reshape(B, S, n_heads, hd).transpose(0, 2, 1, 3)
    attn = pallas_attention(split(q), split(k), split(v))     # (B, H, S, hd)
    attn = attn.transpose(0, 2, 1, 3).reshape(B * S, E)

    # out-proj + residual + LN1 fused; dropout -> identity (eval mode).
    x1 = pallas_linear_residual_ln(attn, bp["wo"], bp["bo"], x2,
                                   bp["ln1_g"], bp["ln1_b"])
    # FFN (w1 + ReLU + w2) + residual + LN2 fused.
    x3 = pallas_ffn_residual_ln(x1, bp["w1"], bp["b1"], bp["w2"], bp["b2"],
                                bp["ln2_g"], bp["ln2_b"])
    return x3.reshape(B, S, E)


def vit_forward(x, params, *, patch_size, n_heads):
    # layout: x is NCHW (B, C, H, W), same as the PyTorch module.
    B, C, H, W = x.shape
    P = patch_size
    EMB = params["patch_w"].shape[0]
    nH, nW = H // P, W // P
    N = nH * nW

    # Conv2d(kernel=stride=P, pad=0) == extract non-overlapping patches + matmul.
    patches = x.reshape(B, C, nH, P, nW, P).transpose(0, 2, 4, 1, 3, 5)
    patches = patches.reshape(B * N, C * P * P)               # per-patch (C,ph,pw) order
    w_patch = params["patch_w"].reshape(EMB, C * P * P).T     # (C*P*P, EMB)
    tok = pallas_linear(patches, w_patch, params["patch_b"])  # K padded to 128 inside
    tok = tok.reshape(B, N, EMB)

    cls = jnp.broadcast_to(params["cls"], (B, 1, EMB))
    seq = jnp.concatenate([cls, tok], axis=1) + params["pos"]  # (B, N+1, EMB)

    for bp in params["blocks"]:
        seq = transformer_block(seq, bp, n_heads)

    # Final LN is per-row -> apply only to the CLS rows, fused with classifier.
    cls_tok = seq[:, 0]                                        # (B, EMB)
    logits = pallas_final_ln_classifier(cls_tok, params["final_ln_g"],
                                        params["final_ln_b"],
                                        params["cls_w"], params["cls_b"])
    return logits


# ----------------------------------------------------------------------------
if __name__ == "__main__":
    # Small shapes consistent with the module's forward.
    B, C, IMG, P = 2, 3, 16, 4            # -> 16 patches, seq_len = 17
    EMB, HEADS, LAYERS, FF_MULT = 64, 4, 2, 4
    NUM_CLASSES = 10
    SEQ = (IMG // P) ** 2 + 1

    key = jax.random.PRNGKey(0)
    kx, kp = jax.random.split(key)
    x = jax.random.normal(kx, (B, C, IMG, IMG), jnp.float32)   # NCHW input
    params = init_params(kp, C=C, P=P, EMB=EMB, S=SEQ, LAYERS=LAYERS,
                         FF_MULT=FF_MULT, NUM_CLASSES=NUM_CLASSES)

    fwd = jax.jit(functools.partial(vit_forward, patch_size=P, n_heads=HEADS))
    logits = fwd(x, params)
    logits = jax.block_until_ready(logits)

    assert logits.shape == (B, NUM_CLASSES), logits.shape
    assert bool(jnp.all(jnp.isfinite(logits)))
    print("KERNEL_OK")
</pallas_src>

<mosaic_0001>
module attributes {stable_mosaic.version = 11 : i64} {
  func.func @_linear_kernel(%arg0: i32, %arg1: i32, %arg2: i32, %arg3: memref<32x128xf32, #tpu.memory_space<vmem>>, %arg4: memref<128x128xf32, #tpu.memory_space<vmem>>, %arg5: memref<1x128xf32, #tpu.memory_space<vmem>>, %arg6: memref<32x128xf32, #tpu.memory_space<vmem>>, %arg7: memref<32x128xf32, #tpu.memory_space<vmem>>) attributes {dimension_semantics = [#tpu.dimension_semantics<parallel>, #tpu.dimension_semantics<parallel>, #tpu.dimension_semantics<arbitrary>], iteration_bounds = array<i64: 1, 1, 1>, scalar_prefetch = 0 : i64, scratch_operands = 1 : i64, tpu.core_type = #tpu.core_type<tc>, window_params = [{transform_indices = @transform_0, window_bounds = array<i64: 32, 128>}, {transform_indices = @transform_1, window_bounds = array<i64: 128, 128>}, {transform_indices = @transform_2, window_bounds = array<i64: 1, 128>}, {transform_indices = @transform_3, window_bounds = array<i64: 32, 128>}]} {
    %c0_i32 = arith.constant 0 : i32
    %0 = arith.cmpi eq, %arg2, %c0_i32 : i32
    %1 = arith.extui %0 : i1 to i32
    %c0_i32_0 = arith.constant 0 : i32
    %2 = arith.cmpi ne, %1, %c0_i32_0 : i32
    scf.if %2 {
      %cst_10 = arith.constant 0.000000e+00 : f32
      %12 = vector.broadcast %cst_10 : f32 to vector<32x128xf32>
      %c0_11 = arith.constant 0 : index
      %c0_12 = arith.constant 0 : index
      %13 = vector.load %arg7[%c0_11, %c0_12] : memref<32x128xf32, #tpu.memory_space<vmem>>, vector<32x128xf32>
      tpu.vector_store %arg7[%c0_11, %c0_12], %12 {strides = array<i32>} : memref<32x128xf32, #tpu.memory_space<vmem>>, vector<32x128xf32>,
    } else {
    }
    %c0 = arith.constant 0 : index
    %c0_1 = arith.constant 0 : index
    %3 = vector.load %arg7[%c0, %c0_1] : memref<32x128xf32, #tpu.memory_space<vmem>>, vector<32x128xf32>
    %c0_2 = arith.constant 0 : index
    %c0_3 = arith.constant 0 : index
    %4 = vector.load %arg3[%c0_2, %c0_3] : memref<32x128xf32, #tpu.memory_space<vmem>>, vector<32x128xf32>
    %c0_4 = arith.constant 0 : index
    %c0_5 = arith.constant 0 : index
    %5 = vector.load %arg4[%c0_4, %c0_5] : memref<128x128xf32, #tpu.memory_space<vmem>>, vector<128x128xf32>
    %cst = arith.constant dense<0.000000e+00> : vector<32x128xf32>
    %6 = tpu.matmul %4, %5, %cst {dimension_numbers = #tpu.dot_dimension_numbers<[1], [0], [0], [1], [0, 0, 1, 1], [], []>} : vector<32x128xf32>, vector<128x128xf32>, vector<32x128xf32> -> vector<32x128xf32>
    %7 = arith.addf %3, %6 : vector<32x128xf32>
    %c0_6 = arith.constant 0 : index
    %c0_7 = arith.constant 0 : index
    %8 = vector.load %arg7[%c0_6, %c0_7] : memref<32x128xf32, #tpu.memory_space<vmem>>, vector<32x128xf32>
    tpu.vector_store %arg7[%c0_6, %c0_7], %7 {strides = array<i32>} : memref<32x128xf32, #tpu.memory_space<vmem>>, vector<32x128xf32>,
    %c0_i32_8 = arith.constant 0 : i32
    %9 = arith.cmpi eq, %arg2, %c0_i32_8 : i32
    %10 = arith.extui %9 : i1 to i32
    %c0_i32_9 = arith.constant 0 : i32
    %11 = arith.cmpi ne, %10, %c0_i32_9 : i32
    scf.if %11 {
      %c0_10 = arith.constant 0 : index
      %c0_11 = arith.constant 0 : index
      %12 = vector.load %arg7[%c0_10, %c0_11] : memref<32x128xf32, #tpu.memory_space<vmem>>, vector<32x128xf32>
      %c0_12 = arith.constant 0 : index
      %c0_13 = arith.constant 0 : index
      %13 = vector.load %arg5[%c0_12, %c0_13] : memref<1x128xf32, #tpu.memory_space<vmem>>, vector<1x128xf32>
      %14 = vector.broadcast %13 : vector<1x128xf32> to vector<32x128xf32>
      %15 = arith.addf %12, %14 : vector<32x128xf32>
      %c0_14 = arith.constant 0 : index
      %c0_15 = arith.constant 0 : index
      %16 = vector.load %arg6[%c0_14, %c0_15] : memref<32x128xf32, #tpu.memory_space<vmem>>, vector<32x128xf32>
      tpu.vector_store %arg6[%c0_14, %c0_15], %15 {strides = array<i32>} : memref<32x128xf32, #tpu.memory_space<vmem>>, vector<32x128xf32>,
    } else {
    }
    return
  }
  func.func @transform_0(%arg0: i32, %arg1: i32, %arg2: i32) -> (i32, i32) {
    %c0_i32 = arith.constant 0 : i32
    return %arg0, %arg2 : i32, i32
  }
  func.func @transform_1(%arg0: i32, %arg1: i32, %arg2: i32) -> (i32, i32) {
    %c0_i32 = arith.constant 0 : i32
    return %arg2, %arg1 : i32, i32
  }
  func.func @transform_2(%arg0: i32, %arg1: i32, %arg2: i32) -> (i32, i32) {
    %c0_i32 = arith.constant 0 : i32
    %c0_i32_0 = arith.constant 0 : i32
    return %c0_i32, %arg1 : i32, i32
  }
  func.func @transform_3(%arg0: i32, %arg1: i32, %arg2: i32) -> (i32, i32) {
    %c0_i32 = arith.constant 0 : i32
    return %arg0, %arg1 : i32, i32
  }
}

module attributes {stable_mosaic.version = 11 : i64} {
  func.func @_linear_kernel(%arg0: i32, %arg1: i32, %arg2: i32, %arg3: memref<40x128xf32, #tpu.memory_space<vmem>>, %arg4: memref<128x256xf32, #tpu.memory_space<vmem>>, %arg5: memref<1x256xf32, #tpu.memory_space<vmem>>, %arg6: memref<40x256xf32, #tpu.memory_space<vmem>>, %arg7: memref<40x256xf32, #tpu.memory_space<vmem>>) attributes {dimension_semantics = [#tpu.dimension_semantics<parallel>, #tpu.dimension_semantics<parallel>, #tpu.dimension_semantics<arbitrary>], iteration_bounds = array<i64: 1, 1, 1>, scalar_prefetch = 0 : i64, scratch_operands = 1 : i64, tpu.core_type = #tpu.core_type<tc>, window_params = [{transform_indices = @transform_0, window_bounds = array<i64: 40, 128>}, {transform_indices = @transform_1, window_bounds = array<i64: 128, 256>}, {transform_indices = @transform_2, window_bounds = array<i64: 1, 256>}, {transform_indices = @transform_3, window_bounds = array<i64: 40, 256>}]} {
    %c0_i32 = arith.constant 0 : i32
    %0 = arith.cmpi eq, %arg2, %c0_i32 : i32
    %1 = arith.extui %0 : i1 to i32
    %c0_i32_0 = arith.constant 0 : i32
    %2 = arith.cmpi ne, %1, %c0_i32_0 : i32
    scf.if %2 {
      %cst_10 = arith.constant 0.000000e+00 : f32
      %12 = vector.broadcast %cst_10 : f32 to vector<40x256xf32>
      %c0_11 = arith.constant 0 : index
      %c0_12 = arith.constant 0 : index
      %13 = vector.load %arg7[%c0_11, %c0_12] : memref<40x256xf32, #tpu.memory_space<vmem>>, vector<40x256xf32>
      tpu.vector_store %arg7[%c0_11, %c0_12], %12 {strides = array<i32>} : memref<40x256xf32, #tpu.memory_space<vmem>>, vector<40x256xf32>,
    } else {
    }
    %c0 = arith.constant 0 : index
    %c0_1 = arith.constant 0 : index
    %3 = vector.load %arg7[%c0, %c0_1] : memref<40x256xf32, #tpu.memory_space<vmem>>, vector<40x256xf32>
    %c0_2 = arith.constant 0 : index
    %c0_3 = arith.constant 0 : index
    %4 = vector.load %arg3[%c0_2, %c0_3] : memref<40x128xf32, #tpu.memory_space<vmem>>, vector<40x128xf32>
    %c0_4 = arith.constant 0 : index
    %c0_5 = arith.constant 0 : index
    %5 = vector.load %arg4[%c0_4, %c0_5] : memref<128x256xf32, #tpu.memory_space<vmem>>, vector<128x256xf32>
    %cst = arith.constant dense<0.000000e+00> : vector<40x256xf32>
    %6 = tpu.matmul %4, %5, %cst {dimension_numbers = #tpu.dot_dimension_numbers<[1], [0], [0], [1], [0, 0, 1, 1], [], []>} : vector<40x128xf32>, vector<128x256xf32>, vector<40x256xf32> -> vector<40x256xf32>
    %7 = arith.addf %3, %6 : vector<40x256xf32>
    %c0_6 = arith.constant 0 : index
    %c0_7 = arith.constant 0 : index
    %8 = vector.load %arg7[%c0_6, %c0_7] : memref<40x256xf32, #tpu.memory_space<vmem>>, vector<40x256xf32>
    tpu.vector_store %arg7[%c0_6, %c0_7], %7 {strides = array<i32>} : memref<40x256xf32, #tpu.memory_space<vmem>>, vector<40x256xf32>,
    %c0_i32_8 = arith.constant 0 : i32
    %9 = arith.cmpi eq, %arg2, %c0_i32_8 : i32
    %10 = arith.extui %9 : i1 to i32
    %c0_i32_9 = arith.constant 0 : i32
    %11 = arith.cmpi ne, %10, %c0_i32_9 : i32
    scf.if %11 {
      %c0_10 = arith.constant 0 : index
      %c0_11 = arith.constant 0 : index
      %12 = vector.load %arg7[%c0_10, %c0_11] : memref<40x256xf32, #tpu.memory_space<vmem>>, vector<40x256xf32>
      %c0_12 = arith.constant 0 : index
      %c0_13 = arith.constant 0 : index
      %13 = vector.load %arg5[%c0_12, %c0_13] : memref<1x256xf32, #tpu.memory_space<vmem>>, vector<1x256xf32>
      %14 = vector.broadcast %13 : vector<1x256xf32> to vector<40x256xf32>
      %15 = arith.addf %12, %14 : vector<40x256xf32>
      %c0_14 = arith.constant 0 : index
      %c0_15 = arith.constant 0 : index
      %16 = vector.load %arg6[%c0_14, %c0_15] : memref<40x256xf32, #tpu.memory_space<vmem>>, vector<40x256xf32>
      tpu.vector_store %arg6[%c0_14, %c0_15], %15 {strides = array<i32>} : memref<40x256xf32, #tpu.memory_space<vmem>>, vector<40x256xf32>,
    } else {
    }
    return
  }
  func.func @transform_0(%arg0: i32, %arg1: i32, %arg2: i32) -> (i32, i32) {
    %c0_i32 = arith.constant 0 : i32
    return %arg0, %arg2 : i32, i32
  }
  func.func @transform_1(%arg0: i32, %arg1: i32, %arg2: i32) -> (i32, i32) {
    %c0_i32 = arith.constant 0 : i32
    return %arg2, %arg1 : i32, i32
  }
  func.func @transform_2(%arg0: i32, %arg1: i32, %arg2: i32) -> (i32, i32) {
    %c0_i32 = arith.constant 0 : i32
    %c0_i32_0 = arith.constant 0 : i32
    return %c0_i32, %arg1 : i32, i32
  }
  func.func @transform_3(%arg0: i32, %arg1: i32, %arg2: i32) -> (i32, i32) {
    %c0_i32 = arith.constant 0 : i32
    return %arg0, %arg1 : i32, i32
  }
}

module attributes {stable_mosaic.version = 11 : i64} {
  func.func @_attn_kernel(%arg0: i32, %arg1: memref<1x4x17x16xf32, #tpu.memory_space<vmem>>, %arg2: memref<1x4x17x16xf32, #tpu.memory_space<vmem>>, %arg3: memref<1x4x17x16xf32, #tpu.memory_space<vmem>>, %arg4: memref<1x4x17x16xf32, #tpu.memory_space<vmem>>) attributes {dimension_semantics = [#tpu.dimension_semantics<parallel>], iteration_bounds = array<i64: 2>, scalar_prefetch = 0 : i64, scratch_operands = 0 : i64, tpu.core_type = #tpu.core_type<tc>, window_params = [{transform_indices = @transform_0, window_bounds = array<i64: 1, 4, 17, 16>}, {transform_indices = @transform_1, window_bounds = array<i64: 1, 4, 17, 16>}, {transform_indices = @transform_2, window_bounds = array<i64: 1, 4, 17, 16>}, {transform_indices = @transform_3, window_bounds = array<i64: 1, 4, 17, 16>}]} {
    %c0 = arith.constant 0 : index
    %c0_0 = arith.constant 0 : index
    %c0_1 = arith.constant 0 : index
    %c0_2 = arith.constant 0 : index
    %0 = vector.load %arg1[%c0, %c0_0, %c0_1, %c0_2] : memref<1x4x17x16xf32, #tpu.memory_space<vmem>>, vector<1x4x17x16xf32>
    %1 = vector.shape_cast %0 : vector<1x4x17x16xf32> to vector<4x17x16xf32>
    %c0_3 = arith.constant 0 : index
    %c0_4 = arith.constant 0 : index
    %c0_5 = arith.constant 0 : index
    %c0_6 = arith.constant 0 : index
    %2 = vector.load %arg2[%c0_3, %c0_4, %c0_5, %c0_6] : memref<1x4x17x16xf32, #tpu.memory_space<vmem>>, vector<1x4x17x16xf32>
    %3 = vector.shape_cast %2 : vector<1x4x17x16xf32> to vector<4x17x16xf32>
    %c0_7 = arith.constant 0 : index
    %c0_8 = arith.constant 0 : index
    %c0_9 = arith.constant 0 : index
    %c0_10 = arith.constant 0 : index
    %4 = vector.load %arg3[%c0_7, %c0_8, %c0_9, %c0_10] : memref<1x4x17x16xf32, #tpu.memory_space<vmem>>, vector<1x4x17x16xf32>
    %5 = vector.shape_cast %4 : vector<1x4x17x16xf32> to vector<4x17x16xf32>
    "tpu.trace_start"() <{level = 10 : i32, message = "hqd,hkd->hqk"}> : () -> ()
    %cst = arith.constant dense<0.000000e+00> : vector<4x17x17xf32>
    %6 = tpu.matmul %1, %3, %cst {dimension_numbers = #tpu.dot_dimension_numbers<[2], [2], [1], [1], [0, 0, 0, 1, 1, 1], [0], [0]>} : vector<4x17x16xf32>, vector<4x17x16xf32>, vector<4x17x17xf32> -> vector<4x17x17xf32>
    "tpu.trace_stop"() : () -> ()
    %cst_11 = arith.constant 2.500000e-01 : f32
    %7 = vector.broadcast %cst_11 : f32 to vector<4x17x17xf32>
    %8 = arith.mulf %6, %7 : vector<4x17x17xf32>
    %cst_12 = arith.constant dense<0xFF800000> : vector<4x17xf32>
    %9 = vector.multi_reduction <maximumf>, %8, %cst_12 [2] : vector<4x17x17xf32> to vector<4x17xf32>
    %10 = vector.shape_cast %9 : vector<4x17xf32> to vector<4x17x1xf32>
    %11 = vector.broadcast %10 : vector<4x17x1xf32> to vector<4x17x17xf32>
    %12 = arith.subf %8, %11 : vector<4x17x17xf32>
    %13 = math.exp %12 : vector<4x17x17xf32>
    %cst_13 = arith.constant dense<0.000000e+00> : vector<4x17xf32>
    %14 = vector.multi_reduction <add>, %13, %cst_13 [2] : vector<4x17x17xf32> to vector<4x17xf32>
    %15 = vector.shape_cast %14 : vector<4x17xf32> to vector<4x17x1xf32>
    %16 = tpu.reciprocal %15 {approx = true} : vector<4x17x1xf32> -> vector<4x17x1xf32>
    %17 = vector.broadcast %16 : vector<4x17x1xf32> to vector<4x17x17xf32>
    %18 = arith.mulf %13, %17 : vector<4x17x17xf32>
    "tpu.trace_start"() <{level = 10 : i32, message = "hqk,hkd->hqd"}> : () -> ()
    %cst_14 = arith.constant dense<0.000000e+00> : vector<4x17x16xf32>
    %19 = tpu.matmul %18, %5, %cst_14 {dimension_numbers = #tpu.dot_dimension_numbers<[2], [1], [1], [2], [0, 0, 0, 1, 1, 2], [0], [0]>} : vector<4x17x17xf32>, vector<4x17x16xf32>, vector<4x17x16xf32> -> vector<4x17x16xf32>
    "tpu.trace_stop"() : () -> ()
    %c0_15 = arith.constant 0 : index
    %c0_16 = arith.constant 0 : index
    %c0_17 = arith.constant 0 : index
    %c0_18 = arith.constant 0 : index
    %20 = vector.load %arg4[%c0_15, %c0_16, %c0_17, %c0_18] : memref<1x4x17x16xf32, #tpu.memory_space<vmem>>, vector<1x4x17x16xf32>
    %21 = vector.shape_cast %20 : vector<1x4x17x16xf32> to vector<4x17x16xf32>
    %22 = vector.shape_cast %19 : vector<4x17x16xf32> to vector<1x4x17x16xf32>
    tpu.vector_store %arg4[%c0_15, %c0_16, %c0_17, %c0_18], %22 {strides = array<i32>} : memref<1x4x17x16xf32, #tpu.memory_space<vmem>>, vector<1x4x17x16xf32>,
    return
  }
  func.func @transform_0(%arg0: i32) -> (i32, i32, i32, i32) {
    %c0_i32 = arith.constant 0 : i32
    %c0_i32_0 = arith.constant 0 : i32
    %c0_i32_1 = arith.constant 0 : i32
    %c0_i32_2 = arith.constant 0 : i32
    return %arg0, %c0_i32, %c0_i32_0, %c0_i32_1 : i32, i32, i32, i32
  }
  func.func @transform_1(%arg0: i32) -> (i32, i32, i32, i32) {
    %c0_i32 = arith.constant 0 : i32
    %c0_i32_0 = arith.constant 0 : i32
    %c0_i32_1 = arith.constant 0 : i32
    %c0_i32_2 = arith.constant 0 : i32
    return %arg0, %c0_i32, %c0_i32_0, %c0_i32_1 : i32, i32, i32, i32
  }
  func.func @transform_2(%arg0: i32) -> (i32, i32, i32, i32) {
    %c0_i32 = arith.constant 0 : i32
    %c0_i32_0 = arith.constant 0 : i32
    %c0_i32_1 = arith.constant 0 : i32
    %c0_i32_2 = arith.constant 0 : i32
    return %arg0, %c0_i32, %c0_i32_0, %c0_i32_1 : i32, i32, i32, i32
  }
  func.func @transform_3(%arg0: i32) -> (i32, i32, i32, i32) {
    %c0_i32 = arith.constant 0 : i32
    %c0_i32_0 = arith.constant 0 : i32
    %c0_i32_1 = arith.constant 0 : i32
    %c0_i32_2 = arith.constant 0 : i32
    return %arg0, %c0_i32, %c0_i32_0, %c0_i32_1 : i32, i32, i32, i32
  }
}

module attributes {stable_mosaic.version = 11 : i64} {
  func.func @_linear_res_ln_kernel(%arg0: i32, %arg1: memref<40x64xf32, #tpu.memory_space<vmem>>, %arg2: memref<64x64xf32, #tpu.memory_space<vmem>>, %arg3: memref<1x64xf32, #tpu.memory_space<vmem>>, %arg4: memref<40x64xf32, #tpu.memory_space<vmem>>, %arg5: memref<1x64xf32, #tpu.memory_space<vmem>>, %arg6: memref<1x64xf32, #tpu.memory_space<vmem>>, %arg7: memref<40x64xf32, #tpu.memory_space<vmem>>) attributes {dimension_semantics = [#tpu.dimension_semantics<parallel>], iteration_bounds = array<i64: 1>, scalar_prefetch = 0 : i64, scratch_operands = 0 : i64, tpu.core_type = #tpu.core_type<tc>, window_params = [{transform_indices = @transform_0, window_bounds = array<i64: 40, 64>}, {pipeline_mode = #tpu.pipeline_mode<synchronous>, transform_indices = @transform_1, window_bounds = array<i64: 64, 64>}, {pipeline_mode = #tpu.pipeline_mode<synchronous>, transform_indices = @transform_2, window_bounds = array<i64: 1, 64>}, {transform_indices = @transform_3, window_bounds = array<i64: 40, 64>}, {pipeline_mode = #tpu.pipeline_mode<synchronous>, transform_indices = @transform_4, window_bounds = array<i64: 1, 64>}, {pipeline_mode = #tpu.pipeline_mode<synchronous>, transform_indices = @transform_5, window_bounds = array<i64: 1, 64>}, {transform_indices = @transform_6, window_bounds = array<i64: 40, 64>}]} {
    %c0 = arith.constant 0 : index
    %c0_0 = arith.constant 0 : index
    %0 = vector.load %arg1[%c0, %c0_0] : memref<40x64xf32, #tpu.memory_space<vmem>>, vector<40x64xf32>
    %c0_1 = arith.constant 0 : index
    %c0_2 = arith.constant 0 : index
    %1 = vector.load %arg2[%c0_1, %c0_2] : memref<64x64xf32, #tpu.memory_space<vmem>>, vector<64x64xf32>
    %cst = arith.constant dense<0.000000e+00> : vector<40x64xf32>
    %2 = tpu.matmul %0, %1, %cst {dimension_numbers = #tpu.dot_dimension_numbers<[1], [0], [0], [1], [0, 0, 1, 1], [], []>} : vector<40x64xf32>, vector<64x64xf32>, vector<40x64xf32> -> vector<40x64xf32>
    %c0_3 = arith.constant 0 : index
    %c0_4 = arith.constant 0 : index
    %3 = vector.load %arg3[%c0_3, %c0_4] : memref<1x64xf32, #tpu.memory_space<vmem>>, vector<1x64xf32>
    %4 = vector.broadcast %3 : vector<1x64xf32> to vector<40x64xf32>
    %5 = arith.addf %2, %4 : vector<40x64xf32>
    %c0_5 = arith.constant 0 : index
    %c0_6 = arith.constant 0 : index
    %6 = vector.load %arg4[%c0_5, %c0_6] : memref<40x64xf32, #tpu.memory_space<vmem>>, vector<40x64xf32>
    %7 = arith.addf %5, %6 : vector<40x64xf32>
    %cst_7 = arith.constant dense<0.000000e+00> : vector<40xf32>
    %8 = vector.multi_reduction <add>, %7, %cst_7 [1] : vector<40x64xf32> to vector<40xf32>
    %9 = vector.shape_cast %8 : vector<40xf32> to vector<40x1xf32>
    %cst_8 = arith.constant 6.400000e+01 : f32
    %10 = vector.broadcast %cst_8 : f32 to vector<40x1xf32>
    %11 = arith.divf %9, %10 : vector<40x1xf32>
    %12 = vector.broadcast %11 : vector<40x1xf32> to vector<40x64xf32>
    %13 = arith.subf %7, %12 : vector<40x64xf32>
    %14 = arith.mulf %13, %13 : vector<40x64xf32>
    %cst_9 = arith.constant dense<0.000000e+00> : vector<40xf32>
    %15 = vector.multi_reduction <add>, %14, %cst_9 [1] : vector<40x64xf32> to vector<40xf32>
    %16 = vector.shape_cast %15 : vector<40xf32> to vector<40x1xf32>
    %cst_10 = arith.constant 6.400000e+01 : f32
    %17 = vector.broadcast %cst_10 : f32 to vector<40x1xf32>
    %18 = arith.divf %16, %17 : vector<40x1xf32>
    %19 = vector.broadcast %11 : vector<40x1xf32> to vector<40x64xf32>
    %20 = arith.subf %7, %19 : vector<40x64xf32>
    %cst_11 = arith.constant 9.99999974E-6 : f32
    %21 = vector.broadcast %cst_11 : f32 to vector<40x1xf32>
    %22 = arith.addf %18, %21 : vector<40x1xf32>
    %23 = math.rsqrt %22 : vector<40x1xf32>
    %24 = vector.broadcast %23 : vector<40x1xf32> to vector<40x64xf32>
    %25 = arith.mulf %20, %24 : vector<40x64xf32>
    %c0_12 = arith.constant 0 : index
    %c0_13 = arith.constant 0 : index
    %26 = vector.load %arg5[%c0_12, %c0_13] : memref<1x64xf32, #tpu.memory_space<vmem>>, vector<1x64xf32>
    %27 = vector.broadcast %26 : vector<1x64xf32> to vector<40x64xf32>
    %28 = arith.mulf %25, %27 : vector<40x64xf32>
    %c0_14 = arith.constant 0 : index
    %c0_15 = arith.constant 0 : index
    %29 = vector.load %arg6[%c0_14, %c0_15] : memref<1x64xf32, #tpu.memory_space<vmem>>, vector<1x64xf32>
    %30 = vector.broadcast %29 : vector<1x64xf32> to vector<40x64xf32>
    %31 = arith.addf %28, %30 : vector<40x64xf32>
    %c0_16 = arith.constant 0 : index
    %c0_17 = arith.constant 0 : index
    %32 = vector.load %arg7[%c0_16, %c0_17] : memref<40x64xf32, #tpu.memory_space<vmem>>, vector<40x64xf32>
    tpu.vector_store %arg7[%c0_16, %c0_17], %31 {strides = array<i32>} : memref<40x64xf32, #tpu.memory_space<vmem>>, vector<40x64xf32>,
    return
  }
  func.func @transform_0(%arg0: i32) -> (i32, i32) {
    %c0_i32 = arith.constant 0 : i32
    %c0_i32_0 = arith.constant 0 : i32
    return %arg0, %c0_i32 : i32, i32
  }
  func.func @transform_1(%arg0: i32) -> (i32, i32) {
    %c0_i32 = arith.constant 0 : i32
    %c0_i32_0 = arith.constant 0 : i32
    %c0_i32_1 = arith.constant 0 : i32
    return %c0_i32, %c0_i32_0 : i32, i32
  }
  func.func @transform_2(%arg0: i32) -> (i32, i32) {
    %c0_i32 = arith.constant 0 : i32
    %c0_i32_0 = arith.constant 0 : i32
    %c0_i32_1 = arith.constant 0 : i32
    return %c0_i32, %c0_i32_0 : i32, i32
  }
  func.func @transform_3(%arg0: i32) -> (i32, i32) {
    %c0_i32 = arith.constant 0 : i32
    %c0_i32_0 = arith.constant 0 : i32
    return %arg0, %c0_i32 : i32, i32
  }
  func.func @transform_4(%arg0: i32) -> (i32, i32) {
    %c0_i32 = arith.constant 0 : i32
    %c0_i32_0 = arith.constant 0 : i32
    %c0_i32_1 = arith.constant 0 : i32
    return %c0_i32, %c0_i32_0 : i32, i32
  }
  func.func @transform_5(%arg0: i32) -> (i32, i32) {
    %c0_i32 = arith.constant 0 : i32
    %c0_i32_0 = arith.constant 0 : i32
    %c0_i32_1 = arith.constant 0 : i32
    return %c0_i32, %c0_i32_0 : i32, i32
  }
  func.func @transform_6(%arg0: i32) -> (i32, i32) {
    %c0_i32 = arith.constant 0 : i32
    %c0_i32_0 = arith.constant 0 : i32
    return %arg0, %c0_i32 : i32, i32
  }
}

module attributes {stable_mosaic.version = 11 : i64} {
  func.func @_ffn_res_ln_kernel(%arg0: i32, %arg1: memref<40x64xf32, #tpu.memory_space<vmem>>, %arg2: memref<64x256xf32, #tpu.memory_space<vmem>>, %arg3: memref<1x256xf32, #tpu.memory_space<vmem>>, %arg4: memref<256x64xf32, #tpu.memory_space<vmem>>, %arg5: memref<1x64xf32, #tpu.memory_space<vmem>>, %arg6: memref<1x64xf32, #tpu.memory_space<vmem>>, %arg7: memref<1x64xf32, #tpu.memory_space<vmem>>, %arg8: memref<40x64xf32, #tpu.memory_space<vmem>>) attributes {dimension_semantics = [#tpu.dimension_semantics<parallel>], iteration_bounds = array<i64: 1>, scalar_prefetch = 0 : i64, scratch_operands = 0 : i64, tpu.core_type = #tpu.core_type<tc>, window_params = [{transform_indices = @transform_0, window_bounds = array<i64: 40, 64>}, {pipeline_mode = #tpu.pipeline_mode<synchronous>, transform_indices = @transform_1, window_bounds = array<i64: 64, 256>}, {pipeline_mode = #tpu.pipeline_mode<synchronous>, transform_indices = @transform_2, window_bounds = array<i64: 1, 256>}, {pipeline_mode = #tpu.pipeline_mode<synchronous>, transform_indices = @transform_3, window_bounds = array<i64: 256, 64>}, {pipeline_mode = #tpu.pipeline_mode<synchronous>, transform_indices = @transform_4, window_bounds = array<i64: 1, 64>}, {pipeline_mode = #tpu.pipeline_mode<synchronous>, transform_indices = @transform_5, window_bounds = array<i64: 1, 64>}, {pipeline_mode = #tpu.pipeline_mode<synchronous>, transform_indices = @transform_6, window_bounds = array<i64: 1, 64>}, {transform_indices = @transform_7, window_bounds = array<i64: 40, 64>}]} {
    %c0 = arith.constant 0 : index
    %c0_0 = arith.constant 0 : index
    %0 = vector.load %arg1[%c0, %c0_0] : memref<40x64xf32, #tpu.memory_space<vmem>>, vector<40x64xf32>
    %c0_1 = arith.constant 0 : index
    %c0_2 = arith.constant 0 : index
    %1 = vector.load %arg2[%c0_1, %c0_2] : memref<64x256xf32, #tpu.memory_space<vmem>>, vector<64x256xf32>
    %cst = arith.constant dense<0.000000e+00> : vector<40x256xf32>
    %2 = tpu.matmul %0, %1, %cst {dimension_numbers = #tpu.dot_dimension_numbers<[1], [0], [0], [1], [0, 0, 1, 1], [], []>} : vector<40x64xf32>, vector<64x256xf32>, vector<40x256xf32> -> vector<40x256xf32>
    %c0_3 = arith.constant 0 : index
    %c0_4 = arith.constant 0 : index
    %3 = vector.load %arg3[%c0_3, %c0_4] : memref<1x256xf32, #tpu.memory_space<vmem>>, vector<1x256xf32>
    %4 = vector.broadcast %3 : vector<1x256xf32> to vector<40x256xf32>
    %5 = arith.addf %2, %4 : vector<40x256xf32>
    %cst_5 = arith.constant 0.000000e+00 : f32
    %6 = vector.broadcast %cst_5 : f32 to vector<40x256xf32>
    %7 = arith.maximumf %5, %6 : vector<40x256xf32>
    %c0_6 = arith.constant 0 : index
    %c0_7 = arith.constant 0 : index
    %8 = vector.load %arg4[%c0_6, %c0_7] : memref<256x64xf32, #tpu.memory_space<vmem>>, vector<256x64xf32>
    %cst_8 = arith.constant dense<0.000000e+00> : vector<40x64xf32>
    %9 = tpu.matmul %7, %8, %cst_8 {dimension_numbers = #tpu.dot_dimension_numbers<[1], [0], [0], [1], [0, 0, 1, 1], [], []>} : vector<40x256xf32>, vector<256x64xf32>, vector<40x64xf32> -> vector<40x64xf32>
    %c0_9 = arith.constant 0 : index
    %c0_10 = arith.constant 0 : index
    %10 = vector.load %arg5[%c0_9, %c0_10] : memref<1x64xf32, #tpu.memory_space<vmem>>, vector<1x64xf32>
    %11 = vector.broadcast %10 : vector<1x64xf32> to vector<40x64xf32>
    %12 = arith.addf %9, %11 : vector<40x64xf32>
    %13 = arith.addf %12, %0 : vector<40x64xf32>
    %cst_11 = arith.constant dense<0.000000e+00> : vector<40xf32>
    %14 = vector.multi_reduction <add>, %13, %cst_11 [1] : vector<40x64xf32> to vector<40xf32>
    %15 = vector.shape_cast %14 : vector<40xf32> to vector<40x1xf32>
    %cst_12 = arith.constant 6.400000e+01 : f32
    %16 = vector.broadcast %cst_12 : f32 to vector<40x1xf32>
    %17 = arith.divf %15, %16 : vector<40x1xf32>
    %18 = vector.broadcast %17 : vector<40x1xf32> to vector<40x64xf32>
    %19 = arith.subf %13, %18 : vector<40x64xf32>
    %20 = arith.mulf %19, %19 : vector<40x64xf32>
    %cst_13 = arith.constant dense<0.000000e+00> : vector<40xf32>
    %21 = vector.multi_reduction <add>, %20, %cst_13 [1] : vector<40x64xf32> to vector<40xf32>
    %22 = vector.shape_cast %21 : vector<40xf32> to vector<40x1xf32>
    %cst_14 = arith.constant 6.400000e+01 : f32
    %23 = vector.broadcast %cst_14 : f32 to vector<40x1xf32>
    %24 = arith.divf %22, %23 : vector<40x1xf32>
    %25 = vector.broadcast %17 : vector<40x1xf32> to vector<40x64xf32>
    %26 = arith.subf %13, %25 : vector<40x64xf32>
    %cst_15 = arith.constant 9.99999974E-6 : f32
    %27 = vector.broadcast %cst_15 : f32 to vector<40x1xf32>
    %28 = arith.addf %24, %27 : vector<40x1xf32>
    %29 = math.rsqrt %28 : vector<40x1xf32>
    %30 = vector.broadcast %29 : vector<40x1xf32> to vector<40x64xf32>
    %31 = arith.mulf %26, %30 : vector<40x64xf32>
    %c0_16 = arith.constant 0 : index
    %c0_17 = arith.constant 0 : index
    %32 = vector.load %arg6[%c0_16, %c0_17] : memref<1x64xf32, #tpu.memory_space<vmem>>, vector<1x64xf32>
    %33 = vector.broadcast %32 : vector<1x64xf32> to vector<40x64xf32>
    %34 = arith.mulf %31, %33 : vector<40x64xf32>
    %c0_18 = arith.constant 0 : index
    %c0_19 = arith.constant 0 : index
    %35 = vector.load %arg7[%c0_18, %c0_19] : memref<1x64xf32, #tpu.memory_space<vmem>>, vector<1x64xf32>
    %36 = vector.broadcast %35 : vector<1x64xf32> to vector<40x64xf32>
    %37 = arith.addf %34, %36 : vector<40x64xf32>
    %c0_20 = arith.constant 0 : index
    %c0_21 = arith.constant 0 : index
    %38 = vector.load %arg8[%c0_20, %c0_21] : memref<40x64xf32, #tpu.memory_space<vmem>>, vector<40x64xf32>
    tpu.vector_store %arg8[%c0_20, %c0_21], %37 {strides = array<i32>} : memref<40x64xf32, #tpu.memory_space<vmem>>, vector<40x64xf32>,
    return
  }
  func.func @transform_0(%arg0: i32) -> (i32, i32) {
    %c0_i32 = arith.constant 0 : i32
    %c0_i32_0 = arith.constant 0 : i32
    return %arg0, %c0_i32 : i32, i32
  }
  func.func @transform_1(%arg0: i32) -> (i32, i32) {
    %c0_i32 = arith.constant 0 : i32
    %c0_i32_0 = arith.constant 0 : i32
    %c0_i32_1 = arith.constant 0 : i32
    return %c0_i32, %c0_i32_0 : i32, i32
  }
  func.func @transform_2(%arg0: i32) -> (i32, i32) {
    %c0_i32 = arith.constant 0 : i32
    %c0_i32_0 = arith.constant 0 : i32
    %c0_i32_1 = arith.constant 0 : i32
    return %c0_i32, %c0_i32_0 : i32, i32
  }
  func.func @transform_3(%arg0: i32) -> (i32, i32) {
    %c0_i32 = arith.constant 0 : i32
    %c0_i32_0 = arith.constant 0 : i32
    %c0_i32_1 = arith.constant 0 : i32
    return %c0_i32, %c0_i32_0 : i32, i32
  }
  func.func @transform_4(%arg0: i32) -> (i32, i32) {
    %c0_i32 = arith.constant 0 : i32
    %c0_i32_0 = arith.constant 0 : i32
    %c0_i32_1 = arith.constant 0 : i32
    return %c0_i32, %c0_i32_0 : i32, i32
  }
  func.func @transform_5(%arg0: i32) -> (i32, i32) {
    %c0_i32 = arith.constant 0 : i32
    %c0_i32_0 = arith.constant 0 : i32
    %c0_i32_1 = arith.constant 0 : i32
    return %c0_i32, %c0_i32_0 : i32, i32
  }
  func.func @transform_6(%arg0: i32) -> (i32, i32) {
    %c0_i32 = arith.constant 0 : i32
    %c0_i32_0 = arith.constant 0 : i32
    %c0_i32_1 = arith.constant 0 : i32
    return %c0_i32, %c0_i32_0 : i32, i32
  }
  func.func @transform_7(%arg0: i32) -> (i32, i32) {
    %c0_i32 = arith.constant 0 : i32
    %c0_i32_0 = arith.constant 0 : i32
    return %arg0, %c0_i32 : i32, i32
  }
}

module attributes {stable_mosaic.version = 11 : i64} {
  func.func @_ln_classifier_kernel(%arg0: i32, %arg1: memref<2x64xf32, #tpu.memory_space<vmem>>, %arg2: memref<1x64xf32, #tpu.memory_space<vmem>>, %arg3: memref<1x64xf32, #tpu.memory_space<vmem>>, %arg4: memref<64x128xf32, #tpu.memory_space<vmem>>, %arg5: memref<1x128xf32, #tpu.memory_space<vmem>>, %arg6: memref<2x128xf32, #tpu.memory_space<vmem>>) attributes {dimension_semantics = [#tpu.dimension_semantics<arbitrary>], iteration_bounds = array<i64: 1>, scalar_prefetch = 0 : i64, scratch_operands = 0 : i64, tpu.core_type = #tpu.core_type<tc>, window_params = [{pipeline_mode = #tpu.pipeline_mode<synchronous>, transform_indices = @transform_0, window_bounds = array<i64: 2, 64>}, {pipeline_mode = #tpu.pipeline_mode<synchronous>, transform_indices = @transform_1, window_bounds = array<i64: 1, 64>}, {pipeline_mode = #tpu.pipeline_mode<synchronous>, transform_indices = @transform_2, window_bounds = array<i64: 1, 64>}, {pipeline_mode = #tpu.pipeline_mode<synchronous>, transform_indices = @transform_3, window_bounds = array<i64: 64, 128>}, {pipeline_mode = #tpu.pipeline_mode<synchronous>, transform_indices = @transform_4, window_bounds = array<i64: 1, 128>}, {pipeline_mode = #tpu.pipeline_mode<synchronous>, transform_indices = @transform_5, window_bounds = array<i64: 2, 128>}]} {
    %c0 = arith.constant 0 : index
    %c0_0 = arith.constant 0 : index
    %0 = vector.load %arg1[%c0, %c0_0] : memref<2x64xf32, #tpu.memory_space<vmem>>, vector<2x64xf32>
    %cst = arith.constant dense<0.000000e+00> : vector<2xf32>
    %1 = vector.multi_reduction <add>, %0, %cst [1] : vector<2x64xf32> to vector<2xf32>
    %2 = vector.shape_cast %1 : vector<2xf32> to vector<2x1xf32>
    %cst_1 = arith.constant 6.400000e+01 : f32
    %3 = vector.broadcast %cst_1 : f32 to vector<2x1xf32>
    %4 = arith.divf %2, %3 : vector<2x1xf32>
    %5 = vector.broadcast %4 : vector<2x1xf32> to vector<2x64xf32>
    %6 = arith.subf %0, %5 : vector<2x64xf32>
    %7 = arith.mulf %6, %6 : vector<2x64xf32>
    %cst_2 = arith.constant dense<0.000000e+00> : vector<2xf32>
    %8 = vector.multi_reduction <add>, %7, %cst_2 [1] : vector<2x64xf32> to vector<2xf32>
    %9 = vector.shape_cast %8 : vector<2xf32> to vector<2x1xf32>
    %cst_3 = arith.constant 6.400000e+01 : f32
    %10 = vector.broadcast %cst_3 : f32 to vector<2x1xf32>
    %11 = arith.divf %9, %10 : vector<2x1xf32>
    %12 = vector.broadcast %4 : vector<2x1xf32> to vector<2x64xf32>
    %13 = arith.subf %0, %12 : vector<2x64xf32>
    %cst_4 = arith.constant 9.99999974E-6 : f32
    %14 = vector.broadcast %cst_4 : f32 to vector<2x1xf32>
    %15 = arith.addf %11, %14 : vector<2x1xf32>
    %16 = math.rsqrt %15 : vector<2x1xf32>
    %17 = vector.broadcast %16 : vector<2x1xf32> to vector<2x64xf32>
    %18 = arith.mulf %13, %17 : vector<2x64xf32>
    %c0_5 = arith.constant 0 : index
    %c0_6 = arith.constant 0 : index
    %19 = vector.load %arg2[%c0_5, %c0_6] : memref<1x64xf32, #tpu.memory_space<vmem>>, vector<1x64xf32>
    %20 = vector.broadcast %19 : vector<1x64xf32> to vector<2x64xf32>
    %21 = arith.mulf %18, %20 : vector<2x64xf32>
    %c0_7 = arith.constant 0 : index
    %c0_8 = arith.constant 0 : index
    %22 = vector.load %arg3[%c0_7, %c0_8] : memref<1x64xf32, #tpu.memory_space<vmem>>, vector<1x64xf32>
    %23 = vector.broadcast %22 : vector<1x64xf32> to vector<2x64xf32>
    %24 = arith.addf %21, %23 : vector<2x64xf32>
    %c0_9 = arith.constant 0 : index
    %c0_10 = arith.constant 0 : index
    %25 = vector.load %arg4[%c0_9, %c0_10] : memref<64x128xf32, #tpu.memory_space<vmem>>, vector<64x128xf32>
    %cst_11 = arith.constant dense<0.000000e+00> : vector<2x128xf32>
    %26 = tpu.matmul %24, %25, %cst_11 {dimension_numbers = #tpu.dot_dimension_numbers<[1], [0], [0], [1], [0, 0, 1, 1], [], []>} : vector<2x64xf32>, vector<64x128xf32>, vector<2x128xf32> -> vector<2x128xf32>
    %c0_12 = arith.constant 0 : index
    %c0_13 = arith.constant 0 : index
    %27 = vector.load %arg5[%c0_12, %c0_13] : memref<1x128xf32, #tpu.memory_space<vmem>>, vector<1x128xf32>
    %28 = vector.broadcast %27 : vector<1x128xf32> to vector<2x128xf32>
    %29 = arith.addf %26, %28 : vector<2x128xf32>
    %c0_14 = arith.constant 0 : index
    %c0_15 = arith.constant 0 : index
    %30 = vector.load %arg6[%c0_14, %c0_15] : memref<2x128xf32, #tpu.memory_space<vmem>>, vector<2x128xf32>
    tpu.vector_store %arg6[%c0_14, %c0_15], %29 {strides = array<i32>} : memref<2x128xf32, #tpu.memory_space<vmem>>, vector<2x128xf32>,
    return
  }
  func.func @transform_0(%arg0: i32) -> (i32, i32) {
    %c0_i32 = arith.constant 0 : i32
    %c0_i32_0 = arith.constant 0 : i32
    %c0_i32_1 = arith.constant 0 : i32
    return %c0_i32, %c0_i32_0 : i32, i32
  }
  func.func @transform_1(%arg0: i32) -> (i32, i32) {
    %c0_i32 = arith.constant 0 : i32
    %c0_i32_0 = arith.constant 0 : i32
    %c0_i32_1 = arith.constant 0 : i32
    return %c0_i32, %c0_i32_0 : i32, i32
  }
  func.func @transform_2(%arg0: i32) -> (i32, i32) {
    %c0_i32 = arith.constant 0 : i32
    %c0_i32_0 = arith.constant 0 : i32
    %c0_i32_1 = arith.constant 0 : i32
    return %c0_i32, %c0_i32_0 : i32, i32
  }
  func.func @transform_3(%arg0: i32) -> (i32, i32) {
    %c0_i32 = arith.constant 0 : i32
    %c0_i32_0 = arith.constant 0 : i32
    %c0_i32_1 = arith.constant 0 : i32
    return %c0_i32, %c0_i32_0 : i32, i32
  }
  func.func @transform_4(%arg0: i32) -> (i32, i32) {
    %c0_i32 = arith.constant 0 : i32
    %c0_i32_0 = arith.constant 0 : i32
    %c0_i32_1 = arith.constant 0 : i32
    return %c0_i32, %c0_i32_0 : i32, i32
  }
  func.func @transform_5(%arg0: i32) -> (i32, i32) {
    %c0_i32 = arith.constant 0 : i32
    %c0_i32_0 = arith.constant 0 : i32
    %c0_i32_1 = arith.constant 0 : i32
    return %c0_i32, %c0_i32_0 : i32, i32
  }
}

</mosaic_0001>

<bundles_post_ra>
// kernel: vit_forward.10
= control target key start
LH: loop header
LB: loop body
LE: loop exit
PB: predicated region body
PF: predicated region fallthrough
CT: control target
= control target key end

     0   :  { %s367_s1 = inlined_call_operand.vmem [shape: f32[128,128], index: 1, kind: input, shape index: {}]   ;;  %s368_s0 = inlined_call_operand.vmem [shape: f32[32,128], index: 0, kind: input, shape index: {}]   ;;  %s369_s2 = inlined_call_operand.vmem [shape: f32[1,128], index: 2, kind: input, shape index: {}]   ;;  %s370_s3 = inlined_call_operand.vmem [shape: f32[32,128], index: 3, kind: output, shape index: {}]  }
   0x1   :  { %v30_v0 = vld [vmem:[%s367_s1] sm:$0xff]  ;;  %v31_v1 = vld [vmem:[%s367_s1 + $0x8] sm:$0xff]  ;;  %v32_v2 = vld [vmem:[%s367_s1 + $0x10] sm:$0xff] }
   0x2   :  { %v224_v3 = vpack.c.bf16 %v31_v1, %v30_v0  ;;  %v33_v4 = vld [vmem:[%s367_s1 + $0x18] sm:$0xff]  ;;  %v34_v6 = vld [vmem:[%s367_s1 + $0x20] sm:$0xff]  ;;  %v35_v7 = vld [vmem:[%s367_s1 + $0x28] sm:$0xff] }
   0x3   :  { %v228_v5 = vpack.c.bf16 %v33_v4, %v32_v2  ;;  %v232_v8 = vpack.c.bf16 %v35_v7, %v34_v6  ;;  %v26_v9 = vld [vmem:[%s368_s0] sm:$0xff]  ;;  %v28_v10 = vld [vmem:[%s368_s0 + $0x10] sm:$0xff]  ;;  %v37_v12 = vld [vmem:[%s367_s1 + $0x38] sm:$0xff] }
   0x4   :  { %225 = vmatprep.subr.bf16.mxu0 %v224_v3  ;;  %256 = vmatprep.subr.bf16.mxu1 %v224_v3  ;;  %v36_v11 = vld [vmem:[%s367_s1 + $0x30] sm:$0xff]  ;;  %v38_v14 = vld [vmem:[%s367_s1 + $0x40] sm:$0xff]  ;;  %v39_v15 = vld [vmem:[%s367_s1 + $0x48] sm:$0xff] }
   0x5   :  { %227 = vmatpush3.bf16.msra.mxu0 %v224_v3  ;;  %264 = vmatpush3.bf16.msra.mxu1 %v224_v3  ;;  %v236_v13 = vpack.c.bf16 %v37_v12, %v36_v11  ;;  %v240_v16 = vpack.c.bf16 %v39_v15, %v38_v14  ;;  %v40_v17 = vld [vmem:[%s367_s1 + $0x50] sm:$0xff]  ;;  %v41_v18 = vld [vmem:[%s367_s1 + $0x58] sm:$0xff]  ;;  %v42_v20 = vld [vmem:[%s367_s1 + $0x60] sm:$0xff] }
   0x6   :  { %229 = vmatprep.subr.bf16.mxu0 %v228_v5  ;;  %257 = vmatprep.subr.bf16.mxu1 %v228_v5  ;;  %v244_v19 = vpack.c.bf16 %v41_v18, %v40_v17  ;;  %v43_v21 = vld [vmem:[%s367_s1 + $0x68] sm:$0xff]  ;;  %v44_v23 = vld [vmem:[%s367_s1 + $0x70] sm:$0xff]  ;;  %v45_v24 = vld [vmem:[%s367_s1 + $0x78] sm:$0xff] }
   0x7   :  { %218 = vmatprep.mubr.f32.mxu0 %v26_v9  ;;  %221 = vmatprep.mubr.f32.mxu1 %v28_v10  ;;  %v248_v22 = vpack.c.bf16 %v43_v21, %v42_v20  ;;  %v252_v25 = vpack.c.bf16 %v45_v24, %v44_v23  ;;  %v27_v26 = vld [vmem:[%s368_s0 + $0x8] sm:$0xff]  ;;  %v29_v27 = vld [vmem:[%s368_s0 + $0x18] sm:$0xff]  ;;  %v165_v28 = vld [vmem:[%s369_s2] ss:$0 sm:$0xff] }
   0x9   :  { %231 = vmatpush3.bf16.msra.mxu0 %v228_v5  ;;  %265 = vmatpush3.bf16.msra.mxu1 %v228_v5 }
   0xa   :  { %233 = vmatprep.subr.bf16.mxu0 %v232_v8  ;;  %258 = vmatprep.subr.bf16.mxu1 %v232_v8 }
   0xd   :  { %235 = vmatpush3.bf16.msra.mxu0 %v232_v8  ;;  %266 = vmatpush3.bf16.msra.mxu1 %v232_v8 }
   0xe   :  { %237 = vmatprep.subr.bf16.mxu0 %v236_v13  ;;  %259 = vmatprep.subr.bf16.mxu1 %v236_v13 }
  0x11   :  { %239 = vmatpush3.bf16.msra.mxu0 %v236_v13  ;;  %267 = vmatpush3.bf16.msra.mxu1 %v236_v13 }
  0x12   :  { %241 = vmatprep.subr.bf16.mxu0 %v240_v16  ;;  %260 = vmatprep.subr.bf16.mxu1 %v240_v16 }
  0x15   :  { %243 = vmatpush3.bf16.msra.mxu0 %v240_v16  ;;  %268 = vmatpush3.bf16.msra.mxu1 %v240_v16 }
  0x16   :  { %245 = vmatprep.subr.bf16.mxu0 %v244_v19  ;;  %261 = vmatprep.subr.bf16.mxu1 %v244_v19 }
  0x19   :  { %247 = vmatpush3.bf16.msra.mxu0 %v244_v19  ;;  %269 = vmatpush3.bf16.msra.mxu1 %v244_v19 }
  0x1a   :  { %249 = vmatprep.subr.bf16.mxu0 %v248_v22  ;;  %262 = vmatprep.subr.bf16.mxu1 %v248_v22 }
  0x1d   :  { %251 = vmatpush3.bf16.msra.mxu0 %v248_v22  ;;  %270 = vmatpush3.bf16.msra.mxu1 %v248_v22 }
  0x1e   :  { %253 = vmatprep.subr.bf16.mxu0 %v252_v25  ;;  %263 = vmatprep.subr.bf16.mxu1 %v252_v25 }
  0x21   :  { %255 = vmatpush3.bf16.msra.mxu0 %v252_v25  ;;  %271 = vmatpush3.bf16.msra.mxu1 %v252_v25 }
  0x24   :  { %219 = vmatmul.mubr.f32.vlgmr.msra.gmra.mrb[0].mxu0 %v27_v26  ;;  %222 = vmatmul.mubr.f32.vlgmr.msra.gmra.mrb[0].mxu1 %v29_v27 }
  0xf7   :  { %v220_v29 = vpop.f32.mrb[0].mxu0  ;;  %v223_v30 = vpop.f32.mrb[0].mxu1 }
  0xf8   :  { %v154_v31 = vadd.f32 %v220_v29, %v165_v28  ;;  %v156_v32 = vadd.f32 %v223_v30, %v165_v28  ;;  %v112_v33 = vpop.f32.mrb[1].mxu0  ;;  %v122_v34 = vpop.f32.mrb[1].mxu1 }
  0xf9   :  { %v153_v35 = vadd.f32 %v165_v28, %v112_v33  ;;  %v155_v36 = vadd.f32 %v165_v28, %v122_v34 }
  0xfa   :  { %158 = vst [vmem:[%s370_s3 + $0x8] sm:$0xff] %v154_v31  ;;  %160 = vst [vmem:[%s370_s3 + $0x18] sm:$0xff] %v156_v32 }
  0xfb   :  { %157 = vst [vmem:[%s370_s3] sm:$0xff] %v153_v35  ;;  %159 = vst [vmem:[%s370_s3 + $0x10] sm:$0xff] %v155_v36 }

// kernel: vit_forward.11
= control target key start
LH: loop header
LB: loop body
LE: loop exit
PB: predicated region body
PF: predicated region fallthrough
CT: control target
= control target key end

     0   :  { %v288_v3 = vmov 0.0   ;;  %v205_v54 = vlaneseq  ;;  %s458_s1 = inlined_call_operand.vmem [shape: f32[128,256], index: 1, kind: input, shape index: {}]   ;;  %s459_s0 = inlined_call_operand.vmem [shape: f32[40,128], index: 0, kind: input, shape index: {}]   ;;  %s460_s2 = inlined_call_operand.vmem [shape: f32[1,256], index: 2, kind: input, shape index: {}]   ;;  %s461_s3 = inlined_call_operand.vmem [shape: f32[40,256], index: 3, kind: output, shape index: {}]  }
   0x1   :  { %v44_v0 = vld [vmem:[%s458_s1 + $0x8] sm:$0xff]  ;;  %v46_v1 = vld [vmem:[%s458_s1 + $0x18] sm:$0xff]  ;;  %v43_v2 = vld [vmem:[%s458_s1] sm:$0xff]  ;;  %139 = vmatprep.mubr.f32.mxu0 %v288_v3  ;;  %157 = vmatprep.mubr.f32.mxu1 %v288_v3 }
   0x2   :  { %v239_v4 = vpack.c.bf16 %v46_v1, %v44_v0  ;;  %v45_v5 = vld [vmem:[%s458_s1 + $0x10] sm:$0xff]  ;;  %v48_v6 = vld [vmem:[%s458_s1 + $0x28] sm:$0xff]  ;;  %v50_v7 = vld [vmem:[%s458_s1 + $0x38] sm:$0xff]  ;;  %v206_v55 = vshrl.u32 %v205_v54, 7 }
   0x3   :  { %v241_v8 = vpack.c.bf16 %v45_v5, %v43_v2  ;;  %v243_v9 = vpack.c.bf16 %v50_v7, %v48_v6  ;;  %v47_v10 = vld [vmem:[%s458_s1 + $0x20] sm:$0xff]  ;;  %v49_v11 = vld [vmem:[%s458_s1 + $0x30] sm:$0xff]  ;;  %v52_v12 = vld [vmem:[%s458_s1 + $0x48] sm:$0xff] }
   0x4   :  { %240 = vmatprep.subr.bf16.mxu0 %v239_v4  ;;  %271 = vmatprep.subr.bf16.mxu1 %v239_v4  ;;  %v54_v13 = vld [vmem:[%s458_s1 + $0x58] sm:$0xff]  ;;  %v245_v14 = vpack.c.bf16 %v49_v11, %v47_v10  ;;  %v51_v16 = vld [vmem:[%s458_s1 + $0x40] sm:$0xff]  ;;  %v53_v17 = vld [vmem:[%s458_s1 + $0x50] sm:$0xff]  ;;  %v207_v56 = vsub.s32 0, %v206_v55  ;;  %v211_v58 = vsub.s32 1, %v206_v55 }
   0x5   :  { %242 = vmatpush1.bf16.msra.mxu0 %v241_v8  ;;  %279 = vmatpush1.bf16.msra.mxu1 %v241_v8  ;;  %v247_v15 = vpack.c.bf16 %v54_v13, %v52_v12  ;;  %v56_v18 = vld [vmem:[%s458_s1 + $0x68] sm:$0xff]  ;;  %v58_v19 = vld [vmem:[%s458_s1 + $0x78] sm:$0xff]  ;;  %v249_v20 = vpack.c.bf16 %v53_v17, %v51_v16  ;;  %v55_v22 = vld [vmem:[%s458_s1 + $0x60] sm:$0xff] }
   0x6   :  { %244 = vmatprep.subr.bf16.mxu0 %v243_v9  ;;  %272 = vmatprep.subr.bf16.mxu1 %v243_v9  ;;  %v251_v21 = vpack.c.bf16 %v58_v19, %v56_v18  ;;  %v57_v23 = vld [vmem:[%s458_s1 + $0x70] sm:$0xff]  ;;  %v60_v24 = vld [vmem:[%s458_s1 + $0x88] sm:$0xff]  ;;  %v62_v25 = vld [vmem:[%s458_s1 + $0x98] sm:$0xff] }
   0x7   :  { %v253_v26 = vpack.c.bf16 %v57_v23, %v55_v22  ;;  %v255_v27 = vpack.c.bf16 %v62_v25, %v60_v24  ;;  %v59_v28 = vld [vmem:[%s458_s1 + $0x80] sm:$0xff]  ;;  %v61_v29 = vld [vmem:[%s458_s1 + $0x90] sm:$0xff]  ;;  %v64_v30 = vld [vmem:[%s458_s1 + $0xa8] sm:$0xff] }
   0x8   :  { %v66_v31 = vld [vmem:[%s458_s1 + $0xb8] sm:$0xff]  ;;  %v257_v32 = vpack.c.bf16 %v61_v29, %v59_v28  ;;  %v63_v34 = vld [vmem:[%s458_s1 + $0xa0] sm:$0xff]  ;;  %v65_v35 = vld [vmem:[%s458_s1 + $0xb0] sm:$0xff] }
   0x9   :  { %246 = vmatpush1.bf16.msra.mxu0 %v245_v14  ;;  %280 = vmatpush1.bf16.msra.mxu1 %v245_v14  ;;  %v259_v33 = vpack.c.bf16 %v66_v31, %v64_v30  ;;  %v68_v36 = vld [vmem:[%s458_s1 + $0xc8] sm:$0xff]  ;;  %v70_v37 = vld [vmem:[%s458_s1 + $0xd8] sm:$0xff]  ;;  %v261_v38 = vpack.c.bf16 %v65_v35, %v63_v34  ;;  %v67_v40 = vld [vmem:[%s458_s1 + $0xc0] sm:$0xff] }
   0xa   :  { %248 = vmatprep.subr.bf16.mxu0 %v247_v15  ;;  %273 = vmatprep.subr.bf16.mxu1 %v247_v15  ;;  %v263_v39 = vpack.c.bf16 %v70_v37, %v68_v36  ;;  %v69_v41 = vld [vmem:[%s458_s1 + $0xd0] sm:$0xff]  ;;  %v72_v42 = vld [vmem:[%s458_s1 + $0xe8] sm:$0xff]  ;;  %v74_v43 = vld [vmem:[%s458_s1 + $0xf8] sm:$0xff] }
   0xb   :  { %v265_v44 = vpack.c.bf16 %v69_v41, %v67_v40  ;;  %v267_v45 = vpack.c.bf16 %v74_v43, %v72_v42  ;;  %v71_v46 = vld [vmem:[%s458_s1 + $0xe0] sm:$0xff]  ;;  %v73_v47 = vld [vmem:[%s458_s1 + $0xf0] sm:$0xff]  ;;  %v41_v50 = vld [vmem:[%s459_s0 + $0x18] sm:$0xff] }
   0xc   :  { %v269_v48 = vpack.c.bf16 %v73_v47, %v71_v46  ;;  %v38_v49 = vld [vmem:[%s459_s0] sm:$0xff]  ;;  %v39_v51 = vld [vmem:[%s459_s0 + $0x8] sm:$0xff]  ;;  %v40_v53 = vld [vmem:[%s459_s0 + $0x10] sm:$0xff] }
   0xd   :  { %250 = vmatpush1.bf16.msra.mxu0 %v249_v20  ;;  %281 = vmatpush1.bf16.msra.mxu1 %v249_v20  ;;  %v42_v52 = vld [vmem:[%s459_s0 + $0x20] sm:$0xff] }
   0xe   :  { %252 = vmatprep.subr.bf16.mxu0 %v251_v21  ;;  %274 = vmatprep.subr.bf16.mxu1 %v251_v21  ;;  %v203_v57 = vld [vmem:[%s460_s2] sm:$0x3] }
   0xf   :  { %v208_v59 = vrot.slane %v203_v57, %v207_v56  ;;  %v212_v60 = vrot.slane %v203_v57, %v211_v58 }
  0x11   :  { %254 = vmatpush1.bf16.msra.mxu0 %v253_v26  ;;  %282 = vmatpush1.bf16.msra.mxu1 %v253_v26 }
  0x12   :  { %256 = vmatprep.subr.bf16.mxu0 %v255_v27  ;;  %275 = vmatprep.subr.bf16.mxu1 %v255_v27 }
  0x15   :  { %258 = vmatpush1.bf16.msra.mxu0 %v257_v32  ;;  %283 = vmatpush1.bf16.msra.mxu1 %v257_v32 }
  0x16   :  { %260 = vmatprep.subr.bf16.mxu0 %v259_v33  ;;  %276 = vmatprep.subr.bf16.mxu1 %v259_v33 }
  0x19   :  { %262 = vmatpush1.bf16.msra.mxu0 %v261_v38  ;;  %284 = vmatpush1.bf16.msra.mxu1 %v261_v38 }
  0x1a   :  { %264 = vmatprep.subr.bf16.mxu0 %v263_v39  ;;  %277 = vmatprep.subr.bf16.mxu1 %v263_v39 }
  0x1d   :  { %266 = vmatpush1.bf16.msra.mxu0 %v265_v44  ;;  %285 = vmatpush1.bf16.msra.mxu1 %v265_v44 }
  0x1e   :  { %268 = vmatprep.subr.bf16.mxu0 %v267_v45  ;;  %278 = vmatprep.subr.bf16.mxu1 %v267_v45 }
  0x21   :  { %270 = vmatpush1.bf16.msra.mxu0 %v269_v48  ;;  %286 = vmatpush1.bf16.msra.mxu1 %v269_v48 }
  0x24   :  { %140 = vmatmul.mubr.f32.vlgmr.msra.gmra.mrb[0].mxu0 %v38_v49  ;;  %158 = vmatmul.mubr.f32.vlgmr.msra.gmra.mrb[0].mxu1 %v41_v50 }
  0x25   :  { %145 = vmatprep.mubr.f32.mxu0 %v288_v3  ;;  %163 = vmatprep.mubr.f32.mxu1 %v288_v3 }
  0x28   :  { %146 = vmatmul.mubr.f32.gmra.mrb[2].mxu0 %v39_v51  ;;  %164 = vmatmul.mubr.f32.gmra.mrb[2].mxu1 %v42_v52 }
  0x29   :  { %151 = vmatprep.mubr.f32.mxu0 %v288_v3 }
  0x2c   :  { %152 = vmatmul.mubr.f32.gmra.mrb[4].mxu0 %v40_v53 }
  0xf7   :  { %v141_v61 = vpop.f32.mrb[0].mxu0  ;;  %v159_v62 = vpop.f32.mrb[0].mxu1 }
  0xf8   :  { %v215_v63 = vadd.f32 %v208_v59, %v141_v61  ;;  %v143_v0 = vpop.f32.mrb[1].mxu0  ;;  %v221_v1 = vadd.f32 %v208_v59, %v159_v62  ;;  %v161_v2 = vpop.f32.mrb[1].mxu1 }
  0xf9   :  { %v216_v3 = vadd.f32 %v212_v60, %v143_v0  ;;  %v222_v4 = vadd.f32 %v212_v60, %v161_v2 }
  0xfa   :  { %225 = vst [vmem:[%s461_s3] sm:$0xff] %v215_v63  ;;  %231 = vst [vmem:[%s461_s3 + $0x30] sm:$0xff] %v221_v1 }
  0xfb   :  { %226 = vst [vmem:[%s461_s3 + $0x8] sm:$0xff] %v216_v3  ;;  %v147_v5 = vpop.f32.mrb[2].mxu0  ;;  %232 = vst [vmem:[%s461_s3 + $0x38] sm:$0xff] %v222_v4  ;;  %v165_v6 = vpop.f32.mrb[2].mxu1 }
  0xfc   :  { %v217_v7 = vadd.f32 %v208_v59, %v147_v5  ;;  %v149_v8 = vpop.f32.mrb[3].mxu0  ;;  %v223_v9 = vadd.f32 %v208_v59, %v165_v6  ;;  %v167_v10 = vpop.f32.mrb[3].mxu1 }
  0xfd   :  { %v218_v11 = vadd.f32 %v212_v60, %v149_v8  ;;  %v224_v12 = vadd.f32 %v212_v60, %v167_v10 }
  0xfe   :  { %227 = vst [vmem:[%s461_s3 + $0x10] sm:$0xff] %v217_v7  ;;  %233 = vst [vmem:[%s461_s3 + $0x40] sm:$0xff] %v223_v9 }
  0xff   :  { %228 = vst [vmem:[%s461_s3 + $0x18] sm:$0xff] %v218_v11  ;;  %v153_v13 = vpop.f32.mrb[4].mxu0  ;;  %234 = vst [vmem:[%s461_s3 + $0x48] sm:$0xff] %v224_v12 }
 0x100   :  { %v219_v14 = vadd.f32 %v208_v59, %v153_v13  ;;  %v155_v15 = vpop.f32.mrb[5].mxu0 }
 0x101   :  { %v220_v16 = vadd.f32 %v212_v60, %v155_v15 }
 0x102   :  { %229 = vst [vmem:[%s461_s3 + $0x20] sm:$0xff] %v219_v14 }
 0x103   :  { %230 = vst [vmem:[%s461_s3 + $0x28] sm:$0xff] %v220_v16 }

// kernel: vit_forward.13
= control target key start
LH: loop header
LB: loop body
LE: loop exit
PB: predicated region body
PF: predicated region fallthrough
CT: control target
= control target key end

     0   :  { %v343_v0 = vmov 0.0|0.0   ;;  %vm344_vm0 = vmmov 0   ;;  %v345_v6 = vmov 0.0   ;;  %vm43_vm1 = vcmask 523264   ;;  %s484_s1 = inlined_call_operand.vmem [shape: f32[64,64], index: 1, kind: input, shape index: {}]   ;;  %s485_s0 = inlined_call_operand.vmem [shape: f32[40,64], index: 0, kind: input, shape index: {}]   ;;  %s486_s2 = inlined_call_operand.vmem [shape: f32[1,64], index: 2, kind: input, shape index: {}]   ;;  %s487_s3 = inlined_call_operand.vmem [shape: f32[40,64], index: 3, kind: input, shape index: {}]   ;;  %s488_s4 = inlined_call_operand.vmem [shape: f32[1,64], index: 4, kind: input, shape index: {}]   ;;  %s489_s5 = inlined_call_operand.vmem [shape: f32[1,64], index: 5, kind: input, shape index: {}]   ;;  %s490_s6 = inlined_call_operand.vmem [shape: f32[40,64], index: 6, kind: output, shape index: {}]  }
   0x1   :  { %310 = vmatprep.subr.bf16.mxu0 %v343_v0  ;;  %v28_v1 = vld [vmem:[%s484_s1] sm:$0xff]  ;;  %v29_v2 = vld [vmem:[%s484_s1 + $0x8] sm:$0xff]  ;;  %322 = vmatprep.subr.bf16.mxu1 %v343_v0  ;;  %v30_v3 = vld [vmem:[%s484_s1 + $0x10] sm:$0xff] }
   0x2   :  { %v311_v4 = vpack.c.bf16 %v29_v2, %v28_v1  ;;  %v31_v5 = vld [vmem:[%s484_s1 + $0x18] sm:$0xff]  ;;  %295 = vmatprep.mubr.msk.f32.mxu0 %vm344_vm0, %v345_v6  ;;  %304 = vmatprep.mubr.msk.f32.mxu1 %vm344_vm0, %v345_v6  ;;  %v32_v8 = vld [vmem:[%s484_s1 + $0x20] sm:$0xff]  ;;  %v33_v9 = vld [vmem:[%s484_s1 + $0x28] sm:$0xff] }
   0x3   :  { %v314_v7 = vpack.c.bf16 %v31_v5, %v30_v3  ;;  %v317_v10 = vpack.c.bf16 %v33_v9, %v32_v8  ;;  %v34_v11 = vld [vmem:[%s484_s1 + $0x30] sm:$0xff]  ;;  %v35_v12 = vld [vmem:[%s484_s1 + $0x38] sm:$0xff]  ;;  %v23_v14 = vld [vmem:[%s485_s0] sm:$0xff] }
   0x4   :  { %312 = vmatpush3.bf16.msra.mxu0 %v311_v4  ;;  %326 = vmatpush3.bf16.msra.mxu1 %v311_v4  ;;  %v320_v13 = vpack.c.bf16 %v35_v12, %v34_v11  ;;  %v26_v15 = vld [vmem:[%s485_s0 + $0x18] sm:$0xff]  ;;  %v24_v16 = vld [vmem:[%s485_s0 + $0x8] sm:$0xff]  ;;  %v27_v17 = vld [vmem:[%s485_s0 + $0x20] sm:$0xff] }
   0x5   :  { %313 = vmatprep.subr.bf16.mxu0 %v343_v0  ;;  %323 = vmatprep.subr.bf16.mxu1 %v343_v0  ;;  %v25_v18 = vld [vmem:[%s485_s0 + $0x10] sm:$0xff]  ;;  %v258_v19 = vld [vmem:[%s486_s2] ss:$0 sm:$0xff]  ;;  %v150_v29 = vld [vmem:[%s487_s3 + $0x8] sm:$0xff] }
   0x6   :  { %v149_v22 = vld [vmem:[%s487_s3] sm:$0xff]  ;;  %v151_v39 = vld [vmem:[%s487_s3 + $0x10] sm:$0xff]  ;;  %v152_v44 = vld [vmem:[%s487_s3 + $0x18] sm:$0xff] }
   0x7   :  { %v153_v30 = vld [vmem:[%s487_s3 + $0x20] sm:$0xff] }
   0x8   :  { %315 = vmatpush3.bf16.msra.mxu0 %v314_v7  ;;  %327 = vmatpush3.bf16.msra.mxu1 %v314_v7 }
   0x9   :  { %316 = vmatprep.subr.bf16.mxu0 %v343_v0  ;;  %324 = vmatprep.subr.bf16.mxu1 %v343_v0 }
   0xc   :  { %318 = vmatpush3.bf16.msra.mxu0 %v317_v10  ;;  %328 = vmatpush3.bf16.msra.mxu1 %v317_v10 }
   0xd   :  { %319 = vmatprep.subr.bf16.mxu0 %v343_v0  ;;  %325 = vmatprep.subr.bf16.mxu1 %v343_v0 }
  0x10   :  { %321 = vmatpush3.bf16.msra.mxu0 %v320_v13  ;;  %329 = vmatpush3.bf16.msra.mxu1 %v320_v13 }
  0x13   :  { %296 = vmatmul.mubr.msk.f32.vlgmr.msra.gmra.mrb[0].mxu0 %vm43_vm1, %v23_v14  ;;  %305 = vmatmul.mubr.msk.f32.vlgmr.msra.gmra.mrb[0].mxu1 %vm43_vm1, %v26_v15 }
  0x14   :  { %298 = vmatprep.mubr.msk.f32.mxu0 %vm344_vm0, %v345_v6  ;;  %307 = vmatprep.mubr.msk.f32.mxu1 %vm344_vm0, %v345_v6 }
  0x17   :  { %299 = vmatmul.mubr.msk.f32.gmra.mrb[2].mxu0 %vm43_vm1, %v24_v16  ;;  %308 = vmatmul.mubr.msk.f32.gmra.mrb[2].mxu1 %vm43_vm1, %v27_v17 }
  0x18   :  { %301 = vmatprep.mubr.msk.f32.mxu0 %vm344_vm0, %v345_v6 }
  0x1b   :  { %302 = vmatmul.mubr.msk.f32.gmra.mrb[4].mxu0 %vm43_vm1, %v25_v18 }
  0xe6   :  { %v125_v20 = vpop.f32.mrb[0].mxu0  ;;  %v140_v21 = vpop.f32.mrb[0].mxu1 }
  0xe7   :  { %v126_v23 = vadd.f32 %v258_v19, %v125_v20  ;;  %v297_v24 = vpop.f32.mrb[1].mxu0  ;;  %v306_v25 = vpop.f32.mrb[1].mxu1  ;;  %v141_v40 = vadd.f32 %v258_v19, %v140_v21 }
  0xe8   :  { %v264_v25 = vld [vmem:[%s488_s4] ss:$0 sm:$0xff] }
  0xe9   :  { %v154_v26 = vadd.f32 %v149_v22, %v126_v23  ;;  %v157_v48 = vadd.f32 %v152_v44, %v141_v40 }
  0xea   :  { %v130_v27 = vpop.f32.mrb[2].mxu0  ;;  %v145_v28 = vpop.f32.mrb[2].mxu1 }
  0xeb   :  { %v131_v31 = vadd.f32 %v258_v19, %v130_v27  ;;  %v300_v32 = vpop.f32.mrb[3].mxu0  ;;  %v159_v33 = vsel %vm43_vm1, %v154_v26, 0.0  ;;  %v146_v34 = vadd.f32 %v258_v19, %v145_v28  ;;  %v309_v35 = vpop.f32.mrb[3].mxu1  ;;  %v168_v49 = vsel %vm43_vm1, %v157_v48, 0.0 }
  0xec   :  { %160 = vadd.xlane.f32.xlu0 %v159_v33 }
  0xed   :  { %v155_v36 = vadd.f32 %v150_v29, %v131_v31  ;;  %v158_v37 = vadd.f32 %v153_v30, %v146_v34  ;;  %v265_v29 = vld [vmem:[%s489_s5] ss:$0 sm:$0xff] }
  0xee   :  { %v135_v38 = vpop.f32.mrb[4].mxu0 }
  0xef   :  { %v136_v41 = vadd.f32 %v258_v19, %v135_v38  ;;  %v303_v42 = vpop.f32.mrb[5].mxu0  ;;  %v162_v43 = vsel %vm43_vm1, %v155_v36, 0.0  ;;  %v171_v45 = vsel %vm43_vm1, %v158_v37, 0.0 }
  0xf0   :  { %163 = vadd.xlane.f32.xlu0 %v162_v43 }
  0xf1   :  { %v156_v46 = vadd.f32 %v151_v39, %v136_v41 }
  0xf3   :  { %v165_v47 = vsel %vm43_vm1, %v156_v46, 0.0 }
  0xf4   :  { %172 = vadd.xlane.f32.xlu0 %v171_v45  ;;  %166 = vadd.xlane.f32.xlu1 %v165_v47 }
  0xf8   :  { %169 = vadd.xlane.f32.xlu1 %v168_v49 }
 0x179   :  { %v161_v50 = vpop.xlane.xlu0 %160 }
 0x17a   :  { %v175_v51 = vmul.f32 0.015625, %v161_v50 }
 0x17c   :  { %v180_v52 = vsub.f32 %v154_v26, %v175_v51 }
 0x17d   :  { %v164_v53 = vpop.xlane.xlu0 %163 }
 0x17e   :  { %v176_v54 = vmul.f32 0.015625, %v164_v53  ;;  %v185_v55 = vmul.f32 %v180_v52, %v180_v52 }
 0x180   :  { %v181_v56 = vsub.f32 %v155_v36, %v176_v54  ;;  %v190_v57 = vsel %vm43_vm1, %v185_v55, 0.0 }
 0x181   :  { %v173_v58 = vpop.xlane.xlu0 %172  ;;  %191 = vadd.xlane.f32.xlu1 %v190_v57  ;;  %v167_v59 = vpop.xlane.xlu1 %166 }
 0x182   :  { %v179_v60 = vmul.f32 0.015625, %v173_v58  ;;  %v177_v61 = vmul.f32 0.015625, %v167_v59  ;;  %v186_v62 = vmul.f32 %v181_v56, %v181_v56 }
 0x184   :  { %v184_v63 = vsub.f32 %v158_v37, %v179_v60  ;;  %v182_v0 = vsub.f32 %v156_v46, %v177_v61  ;;  %v193_v1 = vsel %vm43_vm1, %v186_v62, 0.0 }
 0x185   :  { %194 = vadd.xlane.f32.xlu0 %v193_v1  ;;  %v170_v2 = vpop.xlane.xlu1 %169 }
 0x186   :  { %v178_v3 = vmul.f32 0.015625, %v170_v2  ;;  %v187_v4 = vmul.f32 %v182_v0, %v182_v0  ;;  %v189_v7 = vmul.f32 %v184_v63, %v184_v63 }
 0x188   :  { %v183_v5 = vsub.f32 %v157_v48, %v178_v3  ;;  %v196_v6 = vsel %vm43_vm1, %v187_v4, 0.0  ;;  %v202_v9 = vsel %vm43_vm1, %v189_v7, 0.0 }
 0x189   :  { %197 = vadd.xlane.f32.xlu1 %v196_v6 }
 0x18a   :  { %v188_v8 = vmul.f32 %v183_v5, %v183_v5 }
 0x18c   :  { %v199_v10 = vsel %vm43_vm1, %v188_v8, 0.0 }
 0x18d   :  { %203 = vadd.xlane.f32.xlu1 %v202_v9  ;;  %200 = vadd.xlane.f32.xlu0 %v199_v10 }
 0x20e   :  { %v192_v11 = vpop.xlane.xlu1 %191 }
 0x20f   :  { %v205_v12 = vmul.f32 0.015625, %v192_v11 }
 0x211   :  { %v210_v13 = vadd.f32 1e-05, %v205_v12 }
 0x212   :  { %v195_v14 = vpop.xlane.xlu0 %194 }
 0x213   :  { %333 = vrsqrt.f32 %v210_v13  ;;  %v206_v15 = vmul.f32 0.015625, %v195_v14 }
 0x215   :  { %v211_v16 = vadd.f32 1e-05, %v206_v15 }
 0x216   :  { %v198_v17 = vpop.xlane.xlu1 %197 }
 0x217   :  { %335 = vrsqrt.f32 %v211_v16  ;;  %v207_v18 = vmul.f32 0.015625, %v198_v17 }
 0x219   :  { %v212_v19 = vadd.f32 1e-05, %v207_v18 }
 0x21a   :  { %v201_v20 = vpop.xlane.xlu0 %200  ;;  %v204_v21 = vpop.xlane.xlu1 %203 }
 0x21b   :  { %337 = vrsqrt.f32 %v212_v19  ;;  %v208_v22 = vmul.f32 0.015625, %v201_v20  ;;  %v209_v23 = vmul.f32 0.015625, %v204_v21 }
 0x21d   :  { %v334_v24 = vpop.eup %333  ;;  %v213_v26 = vadd.f32 1e-05, %v208_v22  ;;  %v214_v27 = vadd.f32 1e-05, %v209_v23 }
 0x21e   :  { %v220_v28 = vmul.f32 %v334_v24, %v180_v52 }
 0x21f   :  { %339 = vrsqrt.f32 %v213_v26 }
 0x220   :  { %v232_v30 = vmul.f32 %v264_v25, %v220_v28  ;;  %341 = vrsqrt.f32 %v214_v27 }
 0x221   :  { %v336_v31 = vpop.eup %335 }
 0x222   :  { %v244_v32 = vadd.f32 %v265_v29, %v232_v30  ;;  %v221_v33 = vmul.f32 %v336_v31, %v181_v56 }
 0x224   :  { %249 = vst.msk [vmem:[%s490_s6] sm:$0xff] %vm43_vm1, %v244_v32  ;;  %v233_v34 = vmul.f32 %v264_v25, %v221_v33 }
 0x225   :  { %v338_v35 = vpop.eup %337 }
 0x226   :  { %v245_v36 = vadd.f32 %v265_v29, %v233_v34  ;;  %v222_v37 = vmul.f32 %v338_v35, %v182_v0 }
 0x228   :  { %250 = vst.msk [vmem:[%s490_s6 + $0x8] sm:$0xff] %vm43_vm1, %v245_v36  ;;  %v234_v38 = vmul.f32 %v264_v25, %v222_v37 }
 0x229   :  { %v340_v39 = vpop.eup %339 }
 0x22a   :  { %v342_v40 = vpop.eup %341  ;;  %v246_v41 = vadd.f32 %v265_v29, %v234_v38  ;;  %v223_v42 = vmul.f32 %v340_v39, %v183_v5 }
 0x22b   :  { %v224_v43 = vmul.f32 %v342_v40, %v184_v63 }
 0x22c   :  { %251 = vst.msk [vmem:[%s490_s6 + $0x10] sm:$0xff] %vm43_vm1, %v246_v41  ;;  %v235_v44 = vmul.f32 %v264_v25, %v223_v42 }
 0x22d   :  { %v236_v45 = vmul.f32 %v264_v25, %v224_v43 }
 0x22e   :  { %v247_v46 = vadd.f32 %v265_v29, %v235_v44 }
 0x22f   :  { %v248_v47 = vadd.f32 %v265_v29, %v236_v45 }
 0x230   :  { %252 = vst.msk [vmem:[%s490_s6 + $0x18] sm:$0xff] %vm43_vm1, %v247_v46 }
 0x231   :  { %253 = vst.msk [vmem:[%s490_s6 + $0x20] sm:$0xff] %vm43_vm1, %v248_v47 }

// kernel: vit_forward.12
= control target key start
LH: loop header
LB: loop body
LE: loop exit
PB: predicated region body
PF: predicated region fallthrough
CT: control target
= control target key end

     0   :  { %s1585_s12 = smov 0   ;;  %s1884_s0 = inlined_call_operand.vmem [shape: f32[2,4,17,16], index: 0, kind: input, shape index: {}]   ;;  %s1885_s1 = inlined_call_operand.vmem [shape: f32[2,4,17,16], index: 1, kind: input, shape index: {}]   ;;  %s1886_s2 = inlined_call_operand.vmem [shape: f32[2,4,17,16], index: 2, kind: input, shape index: {}]   ;;  %s1887_s3 = inlined_call_operand.vmem [shape: f32[2,4,17,16], index: 3, kind: output, shape index: {}]  }
   0x1 LB: > { %s1247_s13 = sadd.s32 4294967295, %s1560_s12   ;;  %p1251_p0 = scmp.ge.s32.totalorder %s1560_s12, 1  ;;  %s1560_s12 = sphi %s1585_s12, %s13_s12  }
   0x2   : > { %p157_p1 = scmp.lt.s32.totalorder %s1560_s12, 3 }
   0x4   : > { %p158_p2 = pnand %p1251_p0, %p157_p1 }
   0x5   : > { %p191_p3 = scmp.lt.s32.totalorder (!%p158_p2), %s1247_s13, 1  ;;  %v1562_v0 = vmov (!%p158_p2), 0.0|0.0   ;;  %vm1563_vm0 = vmmov (!%p158_p2), 0   ;;  %v1564_v1 = vmov (!%p158_p2), 0.0   ;;  %vm247_vm1 = vcmask (!%p158_p2), 130048  }
   0x6   : > { %161 = sbr.rel (%p158_p2) target bundleno = 796 (0x31c), region = 32  ;;  %1466 = vmatprep.subr.bf16.mxu0 (!%p158_p2), %v1562_v0  ;;  %1470 = vmatprep.subr.bf16.mxu1 (!%p158_p2), %v1562_v0  ;;  %vm1609_vm2 = vmpackc.low (!%p158_p2), %vm247_vm1, %vm247_vm1  ;;  %vm652_vm3 = vcmask (!%p158_p2), 138240   ;;  %vm659_vm4 = vcmask (!%p158_p2), 131072   ;;  %vm795_vm5 = vcmask (!%p158_p2), 1040384   ;;  %vm1157_vm6 = vcmask (!%p158_p2), 122880  }
   0x7   : > { %1352 = vmatprep.mubr.msk.f32.mxu0 (!%p158_p2), %vm1563_vm0, %v1564_v1  ;;  %1367 = vmatprep.mubr.msk.f32.mxu1 (!%p158_p2), %vm1563_vm0, %v1564_v1 }
   0xd   : > { %s1891_s13 = smov (!%p191_p3, %s1247_s13), 1 }
   0xe   : > { %s1599_s14 = smul.u32 96, %s1891_s13 }
  0x10   : > { %s1605_s17 = scalar_lea.vmem %s1885_s1, %s1599_s14  ;;  %s1628_s20 = scalar_lea.vmem %s1884_s0, %s1599_s14 }
  0x11   : > { %v223_v3 = vld [vmem:[%s1605_s17] sm:$0xff]  ;;  %v224_v4 = vld [vmem:[%s1605_s17 + $0x8] sm:$0xff]  ;;  %v226_v5 = vld [vmem:[%s1605_s17 + $0x18] sm:$0xff]  ;;  %s1777_s23 = scalar_lea.vmem %s1886_s2, %s1599_s14  ;;  %s1855_s26 = scalar_lea.vmem %s1887_s3, %s1599_s14 }
  0x12   : > { %v1467_v6 = vpack.c.bf16 %v224_v4, %v223_v3  ;;  %v227_v7 = vld [vmem:[%s1605_s17 + $0x20] sm:$0xff]  ;;  %v225_v9 = vld [vmem:[%s1605_s17 + $0x10] sm:$0x1]  ;;  %v230_v11 = vld [vmem:[%s1605_s17 + $0x38] sm:$0xff] }
  0x13   : > { %v1471_v8 = vpack.c.bf16 %v227_v7, %v226_v5  ;;  %v229_v10 = vld [vmem:[%s1605_s17 + $0x30] sm:$0xff]  ;;  %v228_v12 = vld [vmem:[%s1605_s17 + $0x28] sm:$0x1]  ;;  %v211_v15 = vld [vmem:[%s1628_s20] sm:$0xff] }
  0x14   : > { %1469 = vmatpush3.bf16.xpose.msk.msra.mxu0 %vm1609_vm2, %v1467_v6  ;;  %v232_v13 = vld [vmem:[%s1605_s17 + $0x48] sm:$0xff]  ;;  %v233_v14 = vld [vmem:[%s1605_s17 + $0x50] sm:$0xff]  ;;  %v1475_v16 = vpack.c.bf16 %v230_v11, %v229_v10  ;;  %v214_v17 = vld [vmem:[%s1628_s20 + $0x18] sm:$0xff] }
  0x15   : > { %1473 = vmatpush3.bf16.xpose.msk.msra.mxu1 %vm1609_vm2, %v1471_v8  ;;  %1350 = vmatprep.subr.mxu0 %v1564_v1  ;;  %v1479_v18 = vpack.c.bf16 %v233_v14, %v232_v13  ;;  %v212_v19 = vld [vmem:[%s1628_s20 + $0x8] sm:$0xff]  ;;  %v215_v20 = vld [vmem:[%s1628_s20 + $0x20] sm:$0xff]  ;;  %v213_v21 = vld [vmem:[%s1628_s20 + $0x10] sm:$0x1] }
  0x16   : > { %1365 = vmatprep.subr.mxu1 %v1564_v1  ;;  %v231_v22 = vld [vmem:[%s1605_s17 + $0x40] sm:$0x1]  ;;  %v216_v23 = vld [vmem:[%s1628_s20 + $0x28] sm:$0x1]  ;;  %v234_v24 = vld [vmem:[%s1605_s17 + $0x58] sm:$0x1] }
  0x17   : > { %v217_v25 = vld [vmem:[%s1628_s20 + $0x30] sm:$0xff]  ;;  %v220_v26 = vld [vmem:[%s1628_s20 + $0x48] sm:$0xff]  ;;  %v218_v27 = vld [vmem:[%s1628_s20 + $0x38] sm:$0xff] }
  0x18   : > { %v221_v28 = vld [vmem:[%s1628_s20 + $0x50] sm:$0xff]  ;;  %v219_v29 = vld [vmem:[%s1628_s20 + $0x40] sm:$0x1]  ;;  %v222_v30 = vld [vmem:[%s1628_s20 + $0x58] sm:$0x1] }
  0x1c   : > { %1351 = vmatpush3.xpose.msk.msra.mxu0 %vm247_vm1, %v225_v9 }
  0x1d   : > { %1366 = vmatpush3.xpose.msk.msra.mxu1 %vm247_vm1, %v228_v12  ;;  %1474 = vmatprep.subr.bf16.mxu0 %v1562_v0 }
  0x1e   : > { %1478 = vmatprep.subr.bf16.mxu1 %v1562_v0 }
  0x1f   : > { %1353 = vmatmul.mubr.msk.f32.vlgmr.msra.gmra.mrb[0].mxu0 %vm247_vm1, %v211_v15 }
  0x20   : > { %1368 = vmatmul.mubr.msk.f32.vlgmr.msra.gmra.mrb[0].mxu1 %vm247_vm1, %v214_v17  ;;  %1477 = vmatpush3.bf16.xpose.msk.msra.mxu0 %vm1609_vm2, %v1475_v16 }
  0x21   : > { %1481 = vmatpush3.bf16.xpose.msk.msra.mxu1 %vm1609_vm2, %v1479_v18  ;;  %1355 = vmatprep.mubr.msk.f32.mxu0 %vm1563_vm0, %v1564_v1 }
  0x22   : > { %1370 = vmatprep.mubr.msk.f32.mxu1 %vm1563_vm0, %v1564_v1  ;;  %1380 = vmatprep.subr.mxu0 %v1564_v1 }
  0x23   : > { %1356 = vmatmul.mubr.msk.f32.gmra.mrb[2].mxu0 %vm247_vm1, %v212_v19  ;;  %1395 = vmatprep.subr.mxu1 %v1564_v1 }
  0x24   : > { %1358 = vmatprep.mubr.msk.f32.mxu0 %vm1563_vm0, %v1564_v1  ;;  %1371 = vmatmul.mubr.msk.f32.gmra.mrb[2].mxu1 %vm247_vm1, %v215_v20 }
  0x25   : > { %1373 = vmatprep.mubr.msk.f32.mxu1 %vm1563_vm0, %v1564_v1 }
  0x27   : > { %1359 = vmatmul.mubr.msk.f32.gmra.mrb[4].mxu0 %vm247_vm1, %v213_v21 }
  0x28   : > { %1381 = vmatpush3.xpose.msk.msra.mxu0 %vm247_vm1, %v231_v22  ;;  %1374 = vmatmul.mubr.msk.f32.gmra.mrb[4].mxu1 %vm247_vm1, %v216_v23 }
  0x29   : > { %1396 = vmatpush3.xpose.msk.msra.mxu1 %vm247_vm1, %v234_v24  ;;  %1382 = vmatprep.mubr.msk.f32.mxu0 %vm1563_vm0, %v1564_v1 }
  0x2a   : > { %1397 = vmatprep.mubr.msk.f32.mxu1 %vm1563_vm0, %v1564_v1  ;;  %1482 = vmatprep.subr.bf16.mxu0 %v1562_v0 }
  0x2b   : > { %1383 = vmatmul.mubr.msk.f32.vlgmr.msra.gmra.mrb[6].mxu0 %vm247_vm1, %v217_v25  ;;  %1485 = vmatprep.subr.bf16.mxu1 %v1562_v0 }
  0x2c   : > { %1385 = vmatprep.mubr.msk.f32.mxu0 %vm1563_vm0, %v1564_v1  ;;  %1398 = vmatmul.mubr.msk.f32.vlgmr.msra.gmra.mrb[6].mxu1 %vm247_vm1, %v220_v26 }
  0x2d   : > { %1400 = vmatprep.mubr.msk.f32.mxu1 %vm1563_vm0, %v1564_v1 }
  0x2f   : > { %1386 = vmatmul.mubr.msk.f32.gmra.mrb[8].mxu0 %vm247_vm1, %v218_v27 }
  0x30   : > { %1388 = vmatprep.mubr.msk.f32.mxu0 %vm1563_vm0, %v1564_v1  ;;  %1401 = vmatmul.mubr.msk.f32.gmra.mrb[8].mxu1 %vm247_vm1, %v221_v28 }
  0x31   : > { %1403 = vmatprep.mubr.msk.f32.mxu1 %vm1563_vm0, %v1564_v1 }
  0x33   : > { %1389 = vmatmul.mubr.msk.f32.gmra.mrb[10].mxu0 %vm247_vm1, %v219_v29 }
  0x34   : > { %1404 = vmatmul.mubr.msk.f32.gmra.mrb[10].mxu1 %vm247_vm1, %v222_v30  ;;  %1412 = vmatprep.mubr.msk.f32.mxu0 %vm1563_vm0, %v1564_v1 }
  0x35   : > { %1427 = vmatprep.mubr.msk.f32.mxu1 %vm1563_vm0, %v1564_v1 }
  0xf2   : > { %v332_v31 = vpop.f32.mrb[0].mxu0 }
  0xf3   : > { %v640_v32 = vmul.f32 0.25, %v332_v31  ;;  %v1354_v33 = vpop.f32.mrb[1].mxu0  ;;  %v430_v34 = vpop.f32.mrb[0].mxu1 }
  0xf4   : > { %v1699_v35 = vmul.f32 0.25, %v430_v34  ;;  %v1369_v36 = vpop.f32.mrb[1].mxu1 }
  0xf5   : > { %v653_v37 = vsel %vm652_vm3, %v640_v32, -inf }
  0xf6   : > { %654 = vmax.xlane.f32.xlu0 %v653_v37  ;;  %v337_v38 = vpop.f32.mrb[2].mxu0  ;;  %v663_v42 = vsel %vm652_vm3, %v1699_v35, -inf }
  0xf7   : > { %v641_v39 = vmul.f32 0.25, %v337_v38  ;;  %v1357_v40 = vpop.f32.mrb[3].mxu0  ;;  %v435_v41 = vpop.f32.mrb[2].mxu1 }
  0xf8   : > { %v1704_v43 = vmul.f32 0.25, %v435_v41  ;;  %v1372_v44 = vpop.f32.mrb[3].mxu1 }
  0xf9   : > { %v656_v45 = vsel %vm652_vm3, %v641_v39, -inf }
  0xfa   : > { %664 = vmax.xlane.f32.xlu0 %v663_v42  ;;  %657 = vmax.xlane.f32.xlu1 %v656_v45  ;;  %v342_v46 = vpop.f32.mrb[4].mxu0  ;;  %v666_v50 = vsel %vm652_vm3, %v1704_v43, -inf }
  0xfb   : > { %v642_v47 = vmul.f32 0.25, %v342_v46  ;;  %v1360_v48 = vpop.f32.mrb[5].mxu0  ;;  %v440_v49 = vpop.f32.mrb[4].mxu1 }
  0xfc   : > { %v645_v51 = vmul.f32 0.25, %v440_v49  ;;  %v1375_v52 = vpop.f32.mrb[5].mxu1 }
  0xfd   : > { %v660_v53 = vsel %vm659_vm4, %v642_v47, -inf }
  0xfe   : > { %667 = vmax.xlane.f32.xlu1 %v666_v50  ;;  %661 = vmax.xlane.f32.xlu0 %v660_v53  ;;  %v528_v54 = vpop.f32.mrb[6].mxu0  ;;  %v669_v58 = vsel %vm659_vm4, %v645_v51, -inf }
  0xff   : > { %v646_v55 = vmul.f32 0.25, %v528_v54  ;;  %v1384_v56 = vpop.f32.mrb[7].mxu0  ;;  %v626_v57 = vpop.f32.mrb[6].mxu1 }
 0x100   : > { %v1711_v59 = vmul.f32 0.25, %v626_v57  ;;  %v1399_v60 = vpop.f32.mrb[7].mxu1 }
 0x101   : > { %v672_v61 = vsel %vm652_vm3, %v646_v55, -inf }
 0x102   : > { %670 = vmax.xlane.f32.xlu1 %v669_v58  ;;  %673 = vmax.xlane.f32.xlu0 %v672_v61  ;;  %v533_v62 = vpop.f32.mrb[8].mxu0  ;;  %v681_v4 = vsel %vm652_vm3, %v1711_v59, -inf }
 0x103   : > { %v647_v63 = vmul.f32 0.25, %v533_v62  ;;  %v1387_v2 = vpop.f32.mrb[9].mxu0  ;;  %v631_v3 = vpop.f32.mrb[8].mxu1 }
 0x104   : > { %v1716_v5 = vmul.f32 0.25, %v631_v3  ;;  %v1402_v6 = vpop.f32.mrb[9].mxu1 }
 0x105   : > { %v675_v7 = vsel %vm652_vm3, %v647_v63, -inf }
 0x106   : > { %682 = vmax.xlane.f32.xlu1 %v681_v4  ;;  %676 = vmax.xlane.f32.xlu0 %v675_v7  ;;  %v538_v8 = vpop.f32.mrb[10].mxu0  ;;  %v684_v11 = vsel %vm652_vm3, %v1716_v5, -inf }
 0x107   : > { %v648_v9 = vmul.f32 0.25, %v538_v8  ;;  %v636_v10 = vpop.f32.mrb[10].mxu1  ;;  %v1390_v12 = vpop.f32.mrb[11].mxu0 }
 0x108   : > { %v1721_v13 = vmul.f32 0.25, %v636_v10  ;;  %v1405_v14 = vpop.f32.mrb[11].mxu1 }
 0x109   : > { %v678_v15 = vsel %vm659_vm4, %v648_v9, -inf  ;;  %v236_v14 = vld [vmem:[%s1777_s23 + $0x8] sm:$0xff] }
 0x10a   : > { %685 = vmax.xlane.f32.xlu1 %v684_v11  ;;  %679 = vmax.xlane.f32.xlu0 %v678_v15  ;;  %v687_v16 = vsel %vm659_vm4, %v1721_v13, -inf }
 0x10e   : > { %688 = vmax.xlane.f32.xlu1 %v687_v16 }
 0x183   : > { %v655_v17 = vpop.xlane.xlu0 %654 }
 0x184   : > { %v690_v18 = vsub.f32 %v640_v32, %v655_v17 }
 0x186   : > { %v702_v19 = vmul.f32 1.442695, %v690_v18  ;;  %v238_v18 = vld [vmem:[%s1777_s23 + $0x18] sm:$0xff] }
 0x187   : > { %v665_v20 = vpop.xlane.xlu0 %664  ;;  %v658_v21 = vpop.xlane.xlu1 %657 }
 0x188   : > { %1506 = vpow2.f32 %v702_v19  ;;  %v693_v22 = vsub.f32 %v1699_v35, %v665_v20  ;;  %v691_v23 = vsub.f32 %v641_v39, %v658_v21  ;;  %v239_v19 = vld [vmem:[%s1777_s23 + $0x20] sm:$0xff]  ;;  %v237_v21 = vld [vmem:[%s1777_s23 + $0x10] sm:$0x1] }
 0x189   : > { %v1486_v20 = vpack.c.bf16 %v239_v19, %v238_v18 }
 0x18a   : > { %v708_v24 = vmul.f32 1.442695, %v693_v22  ;;  %v704_v25 = vmul.f32 1.442695, %v691_v23  ;;  %v240_v22 = vld [vmem:[%s1777_s23 + $0x28] sm:$0x1] }
 0x18b   : > { %v668_v26 = vpop.xlane.xlu1 %667  ;;  %v662_v27 = vpop.xlane.xlu0 %661  ;;  %1487 = vmatpush3.bf16.msra.mxu1 %v1486_v20 }
 0x18c   : > { %1508 = vpow2.f32 %v708_v24  ;;  %v694_v28 = vsub.f32 %v1704_v43, %v668_v26  ;;  %v692_v29 = vsub.f32 %v642_v47, %v662_v27  ;;  %1425 = vmatprep.subr.mxu1 %v1564_v1  ;;  %v241_v27 = vld [vmem:[%s1777_s23 + $0x30] sm:$0xff] }
 0x18d   : > { %1510 = vpow2.f32 %v704_v25 }
 0x18e   : > { %v710_v30 = vmul.f32 1.442695, %v694_v28  ;;  %v706_v31 = vmul.f32 1.442695, %v692_v29  ;;  %v242_v28 = vld [vmem:[%s1777_s23 + $0x38] sm:$0xff] }
 0x18f   : > { %v671_v33 = vpop.xlane.xlu1 %670  ;;  %v674_v32 = vpop.xlane.xlu0 %673  ;;  %1426 = vmatpush3.msk.msra.mxu1 %vm795_vm5, %v240_v22 }
 0x190   : > { %1512 = vpow2.f32 %v710_v30  ;;  %v695_v34 = vsub.f32 %v645_v51, %v671_v33  ;;  %v696_v36 = vsub.f32 %v646_v55, %v674_v32  ;;  %1491 = vmatprep.subr.bf16.mxu1 %v1562_v0 }
 0x191   : > { %1514 = vpow2.f32 %v706_v31  ;;  %v1489_v31 = vpack.c.bf16 %v242_v28, %v241_v27 }
 0x192   : > { %v1728_v37 = vpop.eup %1506  ;;  %v712_v35 = vmul.f32 1.442695, %v695_v34  ;;  %v714_v38 = vmul.f32 1.442695, %v696_v36  ;;  %v245_v34 = vld [vmem:[%s1777_s23 + $0x50] sm:$0xff] }
 0x193   : > { %v683_v39 = vpop.xlane.xlu1 %682  ;;  %v677_v40 = vpop.xlane.xlu0 %676  ;;  %v726_v41 = vsel %vm652_vm3, %v1728_v37, 0.0 }
 0x194   : > { %1516 = vpow2.f32 %v712_v35  ;;  %v699_v42 = vsub.f32 %v1711_v59, %v683_v39  ;;  %v697_v43 = vsub.f32 %v647_v63, %v677_v40  ;;  %727 = vadd.xlane.f32.xlu0 %v726_v41 }
 0x195   : > { %1518 = vpow2.f32 %v714_v38 }
 0x196   : > { %v1733_v44 = vpop.eup %1508  ;;  %v720_v45 = vmul.f32 1.442695, %v699_v42  ;;  %v716_v46 = vmul.f32 1.442695, %v697_v43  ;;  %v243_v43 = vld [vmem:[%s1777_s23 + $0x40] sm:$0x1] }
 0x197   : > { %v1735_v47 = vpop.eup %1510  ;;  %v686_v48 = vpop.xlane.xlu1 %685  ;;  %v735_v50 = vsel %vm652_vm3, %v1733_v44, 0.0 }
 0x198   : > { %v680_v49 = vpop.xlane.xlu0 %679  ;;  %1520 = vpow2.f32 %v720_v45  ;;  %v700_v51 = vsub.f32 %v1716_v5, %v686_v48  ;;  %736 = vadd.xlane.f32.xlu1 %v735_v50  ;;  %v729_v53 = vsel %vm652_vm3, %v1735_v47, 0.0 }
 0x199   : > { %v698_v52 = vsub.f32 %v648_v9, %v680_v49  ;;  %1522 = vpow2.f32 %v716_v46  ;;  %730 = vadd.xlane.f32.xlu0 %v729_v53  ;;  %v246_v49 = vld [vmem:[%s1777_s23 + $0x58] sm:$0x1] }
 0x19a   : > { %v1742_v54 = vpop.eup %1512  ;;  %v722_v55 = vmul.f32 1.442695, %v700_v51 }
 0x19b   : > { %v718_v56 = vmul.f32 1.442695, %v698_v52  ;;  %v1744_v57 = vpop.eup %1514  ;;  %v689_v58 = vpop.xlane.xlu1 %688  ;;  %v738_v59 = vsel %vm652_vm3, %v1742_v54, 0.0 }
 0x19c   : > { %1524 = vpow2.f32 %v722_v55  ;;  %v701_v60 = vsub.f32 %v1721_v13, %v689_v58  ;;  %739 = vadd.xlane.f32.xlu1 %v738_v59  ;;  %v732_v61 = vsel %vm659_vm4, %v1744_v57, 0.0  ;;  %v235_v13 = vld [vmem:[%s1777_s23] sm:$0xff] }
 0x19d   : > { %1526 = vpow2.f32 %v718_v56  ;;  %733 = vadd.xlane.f32.xlu0 %v732_v61  ;;  %v1483_v15 = vpack.c.bf16 %v236_v14, %v235_v13 }
 0x19e   : > { %v1751_v62 = vpop.eup %1516  ;;  %v724_v63 = vmul.f32 1.442695, %v701_v60 }
 0x19f   : > { %v1753_v2 = vpop.eup %1518  ;;  %v741_v3 = vsel %vm659_vm4, %v1751_v62, 0.0  ;;  %1484 = vmatpush3.bf16.msra.mxu0 %v1483_v15 }
 0x1a0   : > { %1528 = vpow2.f32 %v724_v63  ;;  %742 = vadd.xlane.f32.xlu1 %v741_v3  ;;  %v744_v4 = vsel %vm652_vm3, %v1753_v2, 0.0  ;;  %1410 = vmatprep.subr.mxu0 %v1564_v1 }
 0x1a1   : > { %745 = vadd.xlane.f32.xlu0 %v744_v4 }
 0x1a2   : > { %v1759_v5 = vpop.eup %1520 }
 0x1a3   : > { %v1761_v6 = vpop.eup %1522  ;;  %v753_v7 = vsel %vm652_vm3, %v1759_v5, 0.0  ;;  %1411 = vmatpush3.msk.msra.mxu0 %vm795_vm5, %v237_v21 }
 0x1a4   : > { %754 = vadd.xlane.f32.xlu1 %v753_v7  ;;  %v747_v8 = vsel %vm652_vm3, %v1761_v6, 0.0  ;;  %1488 = vmatprep.subr.bf16.mxu0 %v1562_v0  ;;  %v244_v0 = vld [vmem:[%s1777_s23 + $0x48] sm:$0xff] }
 0x1a5   : > { %748 = vadd.xlane.f32.xlu0 %v747_v8  ;;  %v1492_v38 = vpack.c.bf16 %v245_v34, %v244_v0 }
 0x1a6   : > { %v1767_v9 = vpop.eup %1524 }
 0x1a7   : > { %v1769_v10 = vpop.eup %1526  ;;  %v756_v11 = vsel %vm652_vm3, %v1767_v9, 0.0 }
 0x1a8   : > { %757 = vadd.xlane.f32.xlu1 %v756_v11  ;;  %v750_v12 = vsel %vm659_vm4, %v1769_v10, 0.0 }
 0x1a9   : > { %751 = vadd.xlane.f32.xlu0 %v750_v12 }
 0x1aa   : > { %v1783_v16 = vpop.eup %1528 }
 0x1ab   : > { %v759_v17 = vsel %vm659_vm4, %v1783_v16, 0.0 }
 0x1ac   : > { %760 = vadd.xlane.f32.xlu1 %v759_v17 }
 0x221   : > { %v728_v23 = vpop.xlane.xlu0 %727 }
 0x222   : > { %1530 = vrcp.f32 %v728_v23 }
 0x225   : > { %v737_v24 = vpop.xlane.xlu1 %736 }
 0x226   : > { %1532 = vrcp.f32 %v737_v24  ;;  %v731_v25 = vpop.xlane.xlu0 %730 }
 0x227   : > { %1534 = vrcp.f32 %v731_v25 }
 0x229   : > { %v740_v26 = vpop.xlane.xlu1 %739 }
 0x22a   : > { %1536 = vrcp.f32 %v740_v26  ;;  %v734_v29 = vpop.xlane.xlu0 %733 }
 0x22b   : > { %1538 = vrcp.f32 %v734_v29 }
 0x22c   : > { %v1531_v30 = vpop.eup %1530 }
 0x22d   : > { %v774_v33 = vmul.f32 %v1531_v30, %v1728_v37  ;;  %v743_v32 = vpop.xlane.xlu1 %742 }
 0x22e   : > { %1540 = vrcp.f32 %v743_v32  ;;  %v746_v36 = vpop.xlane.xlu0 %745 }
 0x22f   : > { %1542 = vrcp.f32 %v746_v36  ;;  %1413 = vmatmul.mubr.msk.f32.vlgmr.msra.gmra.mrb[12].mxu0 %vm652_vm3, %v774_v33 }
 0x230   : > { %v1533_v35 = vpop.eup %1532  ;;  %1415 = vmatprep.mubr.msk.f32.mxu0 %vm1563_vm0, %v1564_v1  ;;  %1490 = vmatpush3.bf16.msra.mxu0 %v1489_v31 }
 0x231   : > { %v1535_v39 = vpop.eup %1534  ;;  %v777_v40 = vmul.f32 %v1533_v35, %v1733_v44  ;;  %v755_v41 = vpop.xlane.xlu1 %754  ;;  %1440 = vmatprep.subr.mxu0 %v1564_v1 }
 0x232   : > { %1544 = vrcp.f32 %v755_v41  ;;  %v749_v37 = vpop.xlane.xlu0 %748  ;;  %v775_v42 = vmul.f32 %v1535_v39, %v1735_v47 }
 0x233   : > { %1546 = vrcp.f32 %v749_v37  ;;  %1428 = vmatmul.mubr.msk.f32.vlgmr.msra.gmra.mrb[12].mxu1 %vm652_vm3, %v777_v40 }
 0x234   : > { %v1537_v45 = vpop.eup %1536  ;;  %1416 = vmatmul.mubr.msk.f32.gmra.mrb[14].mxu0 %vm652_vm3, %v775_v42  ;;  %1493 = vmatpush3.bf16.msra.mxu1 %v1492_v38 }
 0x235   : > { %v1539_v46 = vpop.eup %1538  ;;  %v758_v48 = vpop.xlane.xlu1 %757  ;;  %1418 = vmatprep.mubr.msk.f32.mxu0 %vm1563_vm0, %v1564_v1  ;;  %1430 = vmatprep.mubr.msk.f32.mxu1 %vm1563_vm0, %v1564_v1  ;;  %v778_v44 = vmul.f32 %v1537_v45, %v1742_v54 }
 0x236   : > { %1548 = vrcp.f32 %v758_v48  ;;  %v752_v47 = vpop.xlane.xlu0 %751  ;;  %v776_v50 = vmul.f32 %v1539_v46, %v1744_v57  ;;  %1455 = vmatprep.subr.mxu1 %v1564_v1  ;;  %1441 = vmatpush3.msk.msra.mxu0 %vm795_vm5, %v243_v43 }
 0x237   : > { %1550 = vrcp.f32 %v752_v47  ;;  %1431 = vmatmul.mubr.msk.f32.gmra.mrb[14].mxu1 %vm652_vm3, %v778_v44 }
 0x238   : > { %v1541_v51 = vpop.eup %1540  ;;  %1419 = vmatmul.mubr.msk.f32.gmra.mrb[16].mxu0 %vm652_vm3, %v776_v50  ;;  %1456 = vmatpush3.msk.msra.mxu1 %vm795_vm5, %v246_v49 }
 0x239   : > { %v1543_v52 = vpop.eup %1542  ;;  %v761_v53 = vpop.xlane.xlu1 %760  ;;  %1433 = vmatprep.mubr.msk.f32.mxu1 %vm1563_vm0, %v1564_v1  ;;  %1442 = vmatprep.mubr.msk.f32.mxu0 %vm1563_vm0, %v1564_v1  ;;  %v779_v54 = vmul.f32 %v1541_v51, %v1751_v62 }
 0x23a   : > { %v780_v55 = vmul.f32 %v1543_v52, %v1753_v2  ;;  %1552 = vrcp.f32 %v761_v53 }
 0x23b   : > { %1434 = vmatmul.mubr.msk.f32.gmra.mrb[16].mxu1 %vm652_vm3, %v779_v54 }
 0x23c   : > { %v1545_v56 = vpop.eup %1544  ;;  %1443 = vmatmul.mubr.msk.f32.vlgmr.msra.gmra.mrb[18].mxu0 %vm652_vm3, %v780_v55  ;;  %1457 = vmatprep.mubr.msk.f32.mxu1 %vm1563_vm0, %v1564_v1 }
 0x23d   : > { %v1547_v57 = vpop.eup %1546  ;;  %v783_v58 = vmul.f32 %v1545_v56, %v1759_v5  ;;  %1445 = vmatprep.mubr.msk.f32.mxu0 %vm1563_vm0, %v1564_v1 }
 0x23e   : > { %v781_v59 = vmul.f32 %v1547_v57, %v1761_v6 }
 0x23f   : > { %1458 = vmatmul.mubr.msk.f32.vlgmr.msra.gmra.mrb[18].mxu1 %vm652_vm3, %v783_v58 }
 0x240   : > { %v1549_v60 = vpop.eup %1548  ;;  %1446 = vmatmul.mubr.msk.f32.gmra.mrb[20].mxu0 %vm652_vm3, %v781_v59  ;;  %1460 = vmatprep.mubr.msk.f32.mxu1 %vm1563_vm0, %v1564_v1 }
 0x241   : > { %v1551_v61 = vpop.eup %1550  ;;  %1448 = vmatprep.mubr.msk.f32.mxu0 %vm1563_vm0, %v1564_v1  ;;  %v784_v62 = vmul.f32 %v1549_v60, %v1767_v9 }
 0x242   : > { %v782_v63 = vmul.f32 %v1551_v61, %v1769_v10 }
 0x243   : > { %1461 = vmatmul.mubr.msk.f32.gmra.mrb[20].mxu1 %vm652_vm3, %v784_v62 }
 0x244   : > { %v1553_v2 = vpop.eup %1552  ;;  %1449 = vmatmul.mubr.msk.f32.gmra.mrb[22].mxu0 %vm652_vm3, %v782_v63  ;;  %1463 = vmatprep.mubr.msk.f32.mxu1 %vm1563_vm0, %v1564_v1 }
 0x245   : > { %v785_v3 = vmul.f32 %v1553_v2, %v1783_v16 }
 0x247   : > { %1464 = vmatmul.mubr.msk.f32.gmra.mrb[22].mxu1 %vm652_vm3, %v785_v3 }
 0x302   : > { %v865_v4 = vpop.f32.mrb[12].mxu0 }
 0x303   : > { %1155 = vst.msk [vmem:[%s1855_s26] sm:$0xff] %vm247_vm1, %v865_v4  ;;  %v1414_v5 = vpop.f32.mrb[13].mxu0 }
 0x306   : > { %v957_v1 = vpop.f32.mrb[12].mxu1 }
 0x307   : > { %v870_v6 = vpop.f32.mrb[14].mxu0  ;;  %1159 = vst.msk [vmem:[%s1855_s26 + $0x18] sm:$0xff] %vm247_vm1, %v957_v1  ;;  %v1429_v7 = vpop.f32.mrb[13].mxu1 }
 0x308   : > { %1156 = vst.msk [vmem:[%s1855_s26 + $0x8] sm:$0xff] %vm247_vm1, %v870_v6  ;;  %v1417_v8 = vpop.f32.mrb[15].mxu0 }
 0x30a   : > { %v962_v9 = vpop.f32.mrb[14].mxu1 }
 0x30b   : > { %v875_v10 = vpop.f32.mrb[16].mxu0  ;;  %1160 = vst.msk [vmem:[%s1855_s26 + $0x20] sm:$0xff] %vm247_vm1, %v962_v9  ;;  %v1432_v11 = vpop.f32.mrb[15].mxu1 }
 0x30c   : > { %1158 = vst.msk [vmem:[%s1855_s26 + $0x10] sm:$0x1] %vm1157_vm6, %v875_v10  ;;  %v1420_v12 = vpop.f32.mrb[17].mxu0 }
 0x30e   : > { %v967_v13 = vpop.f32.mrb[16].mxu1 }
 0x30f   : > { %1161 = vst.msk [vmem:[%s1855_s26 + $0x28] sm:$0x1] %vm1157_vm6, %v967_v13  ;;  %v1049_v14 = vpop.f32.mrb[18].mxu0  ;;  %v1435_v15 = vpop.f32.mrb[17].mxu1 }
 0x310   : > { %1162 = vst.msk [vmem:[%s1855_s26 + $0x30] sm:$0xff] %vm247_vm1, %v1049_v14  ;;  %v1444_v16 = vpop.f32.mrb[19].mxu0 }
 0x312   : > { %v1141_v17 = vpop.f32.mrb[18].mxu1 }
 0x313   : > { %v1054_v18 = vpop.f32.mrb[20].mxu0  ;;  %1165 = vst.msk [vmem:[%s1855_s26 + $0x48] sm:$0xff] %vm247_vm1, %v1141_v17  ;;  %v1459_v19 = vpop.f32.mrb[19].mxu1 }
 0x314   : > { %1163 = vst.msk [vmem:[%s1855_s26 + $0x38] sm:$0xff] %vm247_vm1, %v1054_v18  ;;  %v1447_v20 = vpop.f32.mrb[21].mxu0 }
 0x316   : > { %v1146_v21 = vpop.f32.mrb[20].mxu1 }
 0x317   : > { %v1059_v22 = vpop.f32.mrb[22].mxu0  ;;  %1166 = vst.msk [vmem:[%s1855_s26 + $0x50] sm:$0xff] %vm247_vm1, %v1146_v21  ;;  %v1462_v23 = vpop.f32.mrb[21].mxu1 }
 0x318   : > { %1164 = vst.msk [vmem:[%s1855_s26 + $0x40] sm:$0x1] %vm1157_vm6, %v1059_v22  ;;  %v1450_v24 = vpop.f32.mrb[23].mxu0 }
 0x31a   : > { %v1151_v25 = vpop.f32.mrb[22].mxu1 }
 0x31b   : > { %1167 = vst.msk [vmem:[%s1855_s26 + $0x58] sm:$0x1] %vm1157_vm6, %v1151_v25  ;;  %v1465_v26 = vpop.f32.mrb[23].mxu1 }
 0x31c PF: > { %s13_s12 = sadd.s32 1, %s1560_s12  }
 0x31d   : > { %p10_p4 = scmp.ge.s32.totalorder %s13_s12, 4  }
 0x31f   :  { %12 = sbr.rel (!%p10_p4) target bundleno = 1 (0x1), region = 68 }

// kernel: vit_forward.14
= control target key start
LH: loop header
LB: loop body
LE: loop exit
PB: predicated region body
PF: predicated region fallthrough
CT: control target
= control target key end

     0   :  { %v527_v3 = vmov 0.0   ;;  %vm59_vm0 = vcmask 523264   ;;  %s799_s1 = inlined_call_operand.vmem [shape: f32[64,256], index: 1, kind: input, shape index: {}]   ;;  %s800_s3 = inlined_call_operand.vmem [shape: f32[256,64], index: 3, kind: input, shape index: {}]   ;;  %s801_s0 = inlined_call_operand.vmem [shape: f32[40,64], index: 0, kind: input, shape index: {}]   ;;  %s802_s2 = inlined_call_operand.vmem [shape: f32[1,256], index: 2, kind: input, shape index: {}]   ;;  %s803_s4 = inlined_call_operand.vmem [shape: f32[1,64], index: 4, kind: input, shape index: {}]   ;;  %s804_s5 = inlined_call_operand.vmem [shape: f32[1,64], index: 5, kind: input, shape index: {}]   ;;  %s805_s6 = inlined_call_operand.vmem [shape: f32[1,64], index: 6, kind: input, shape index: {}]   ;;  %s806_s7 = inlined_call_operand.vmem [shape: f32[40,64], index: 7, kind: output, shape index: {}]  }
   0x1   :  { %v32_v0 = vld [vmem:[%s799_s1 + $0x8] sm:$0xff]  ;;  %v34_v1 = vld [vmem:[%s799_s1 + $0x18] sm:$0xff]  ;;  %v31_v2 = vld [vmem:[%s799_s1] sm:$0xff]  ;;  %139 = vmatprep.mubr.f32.mxu0 %v527_v3 }
   0x2   :  { %v468_v4 = vpack.c.bf16 %v34_v1, %v32_v0  ;;  %v33_v5 = vld [vmem:[%s799_s1 + $0x10] sm:$0xff]  ;;  %v36_v6 = vld [vmem:[%s799_s1 + $0x28] sm:$0xff]  ;;  %v38_v7 = vld [vmem:[%s799_s1 + $0x38] sm:$0xff] }
   0x3   :  { %v470_v8 = vpack.c.bf16 %v33_v5, %v31_v2  ;;  %v472_v9 = vpack.c.bf16 %v38_v7, %v36_v6  ;;  %v35_v10 = vld [vmem:[%s799_s1 + $0x20] sm:$0xff]  ;;  %v37_v11 = vld [vmem:[%s799_s1 + $0x30] sm:$0xff]  ;;  %v40_v12 = vld [vmem:[%s799_s1 + $0x48] sm:$0xff] }
   0x4   :  { %469 = vmatprep.subr.bf16.mxu0 %v468_v4  ;;  %v42_v13 = vld [vmem:[%s799_s1 + $0x58] sm:$0xff]  ;;  %v474_v14 = vpack.c.bf16 %v37_v11, %v35_v10  ;;  %v39_v16 = vld [vmem:[%s799_s1 + $0x40] sm:$0xff]  ;;  %v41_v17 = vld [vmem:[%s799_s1 + $0x50] sm:$0xff] }
   0x5   :  { %471 = vmatpush1.bf16.msra.mxu0 %v470_v8  ;;  %v476_v15 = vpack.c.bf16 %v42_v13, %v40_v12  ;;  %v44_v18 = vld [vmem:[%s799_s1 + $0x68] sm:$0xff]  ;;  %v46_v19 = vld [vmem:[%s799_s1 + $0x78] sm:$0xff]  ;;  %v43_v20 = vld [vmem:[%s799_s1 + $0x60] sm:$0xff]  ;;  %v478_v25 = vpack.c.bf16 %v41_v17, %v39_v16 }
   0x6   :  { %473 = vmatprep.subr.bf16.mxu0 %v472_v9  ;;  %v45_v21 = vld [vmem:[%s799_s1 + $0x70] sm:$0xff]  ;;  %v196_v22 = vld [vmem:[%s800_s3 + $0x80] sm:$0xff]  ;;  %v197_v23 = vld [vmem:[%s800_s3 + $0x88] sm:$0xff]  ;;  %v480_v30 = vpack.c.bf16 %v46_v19, %v44_v18 }
   0x7   :  { %v180_v24 = vld [vmem:[%s800_s3] sm:$0xff]  ;;  %v484_v26 = vpack.c.bf16 %v197_v23, %v196_v22  ;;  %v181_v27 = vld [vmem:[%s800_s3 + $0x8] sm:$0xff]  ;;  %v198_v28 = vld [vmem:[%s800_s3 + $0x90] sm:$0xff]  ;;  %v482_v38 = vpack.c.bf16 %v45_v21, %v43_v20 }
   0x8   :  { %v199_v29 = vld [vmem:[%s800_s3 + $0x98] sm:$0xff]  ;;  %v486_v31 = vpack.c.bf16 %v181_v27, %v180_v24  ;;  %v182_v33 = vld [vmem:[%s800_s3 + $0x10] sm:$0xff]  ;;  %v200_v35 = vld [vmem:[%s800_s3 + $0xa0] sm:$0xff] }
   0x9   :  { %475 = vmatpush1.bf16.msra.mxu0 %v474_v14  ;;  %v488_v32 = vpack.c.bf16 %v199_v29, %v198_v28  ;;  %v183_v34 = vld [vmem:[%s800_s3 + $0x18] sm:$0xff]  ;;  %485 = vmatprep.subr.bf16.mxu1 %v484_v26  ;;  %v201_v36 = vld [vmem:[%s800_s3 + $0xa8] sm:$0xff]  ;;  %v184_v40 = vld [vmem:[%s800_s3 + $0x20] sm:$0xff]  ;;  %v49_v14 = vlaneseq }
   0xa   :  { %477 = vmatprep.subr.bf16.mxu0 %v476_v15  ;;  %487 = vmatpush3.bf16.msra.mxu1 %v486_v31  ;;  %v490_v37 = vpack.c.bf16 %v183_v34, %v182_v33  ;;  %v492_v39 = vpack.c.bf16 %v201_v36, %v200_v35  ;;  %v185_v41 = vld [vmem:[%s800_s3 + $0x28] sm:$0xff]  ;;  %v202_v42 = vld [vmem:[%s800_s3 + $0xb0] sm:$0xff]  ;;  %v203_v43 = vld [vmem:[%s800_s3 + $0xb8] sm:$0xff] }
   0xb   :  { %489 = vmatprep.subr.bf16.mxu1 %v488_v32  ;;  %v494_v44 = vpack.c.bf16 %v185_v41, %v184_v40  ;;  %v662_v45 = vld [vmem:[%s801_s0] sm:$0xff]  ;;  %v496_v46 = vpack.c.bf16 %v203_v43, %v202_v42  ;;  %v186_v47 = vld [vmem:[%s800_s3 + $0x30] sm:$0xff]  ;;  %v187_v48 = vld [vmem:[%s800_s3 + $0x38] sm:$0xff]  ;;  %v50_v15 = vshrl.u32 %v49_v14, 7 }
   0xc   :  { %v204_v49 = vld [vmem:[%s800_s3 + $0xc0] sm:$0xff]  ;;  %v205_v50 = vld [vmem:[%s800_s3 + $0xc8] sm:$0xff]  ;;  %v498_v51 = vpack.c.bf16 %v187_v48, %v186_v47  ;;  %v206_v56 = vld [vmem:[%s800_s3 + $0xd0] sm:$0xff] }
   0xd   :  { %479 = vmatpush1.bf16.msra.mxu0 %v478_v25  ;;  %v682_v52 = vld [vmem:[%s801_s0 + $0x8] sm:$0xff]  ;;  %v500_v53 = vpack.c.bf16 %v205_v50, %v204_v49  ;;  %v188_v54 = vld [vmem:[%s800_s3 + $0x40] sm:$0xff]  ;;  %v207_v57 = vld [vmem:[%s800_s3 + $0xd8] sm:$0xff]  ;;  %v51_v16 = vsub.s32 0, %v50_v15  ;;  %v55_v18 = vsub.s32 1, %v50_v15 }
   0xe   :  { %481 = vmatprep.subr.bf16.mxu0 %v480_v30  ;;  %491 = vmatpush3.bf16.msra.mxu1 %v490_v37  ;;  %v189_v55 = vld [vmem:[%s800_s3 + $0x48] sm:$0xff]  ;;  %v702_v59 = vld [vmem:[%s801_s0 + $0x10] sm:$0xff]  ;;  %v504_v60 = vpack.c.bf16 %v207_v57, %v206_v56  ;;  %v191_v62 = vld [vmem:[%s800_s3 + $0x58] sm:$0xff] }
   0xf   :  { %493 = vmatprep.subr.bf16.mxu1 %v492_v39  ;;  %v502_v58 = vpack.c.bf16 %v189_v55, %v188_v54  ;;  %v190_v61 = vld [vmem:[%s800_s3 + $0x50] sm:$0xff]  ;;  %v208_v63 = vld [vmem:[%s800_s3 + $0xe0] sm:$0xff]  ;;  %v209_v0 = vld [vmem:[%s800_s3 + $0xe8] sm:$0xff] }
  0x10   :  { %v506_v1 = vpack.c.bf16 %v191_v62, %v190_v61  ;;  %v722_v2 = vld [vmem:[%s801_s0 + $0x18] sm:$0xff]  ;;  %v508_v4 = vpack.c.bf16 %v209_v0, %v208_v63  ;;  %v730_v5 = vld [vmem:[%s801_s0 + $0x20] sm:$0xff]  ;;  %v193_v7 = vld [vmem:[%s800_s3 + $0x68] sm:$0xff] }
  0x11   :  { %483 = vmatpush1.bf16.msra.mxu0 %v482_v38  ;;  %v192_v6 = vld [vmem:[%s800_s3 + $0x60] sm:$0xff]  ;;  %v211_v9 = vld [vmem:[%s800_s3 + $0xf8] sm:$0xff]  ;;  %v194_v11 = vld [vmem:[%s800_s3 + $0x70] sm:$0xff] }
  0x12   :  { %495 = vmatpush3.bf16.msra.mxu1 %v494_v44  ;;  %v510_v8 = vpack.c.bf16 %v193_v7, %v192_v6  ;;  %v195_v12 = vld [vmem:[%s800_s3 + $0x78] sm:$0xff]  ;;  %v47_v17 = vld [vmem:[%s802_s2] sm:$0x3] }
  0x13   :  { %497 = vmatprep.subr.bf16.mxu1 %v496_v46  ;;  %v514_v13 = vpack.c.bf16 %v195_v12, %v194_v11  ;;  %v52_v19 = vrot.slane %v47_v17, %v51_v16  ;;  %v56_v20 = vrot.slane %v47_v17, %v55_v18  ;;  %v418_v54 = vld [vmem:[%s803_s4] ss:$0 sm:$0xff] }
  0x14   :  { %413 = vmatmul.mubr.msk.f32.vlgmr.msra.gmra.mrb[0].mxu0 %vm59_vm0, %v662_v45 }
  0x15   :  { %145 = vmatprep.mubr.f32.mxu0 %v527_v3 }
  0x16   :  { %499 = vmatpush3.bf16.msra.mxu1 %v498_v51 }
  0x17   :  { %501 = vmatprep.subr.bf16.mxu1 %v500_v53 }
  0x18   :  { %414 = vmatmul.mubr.msk.f32.gmra.mrb[2].mxu0 %vm59_vm0, %v682_v52 }
  0x19   :  { %151 = vmatprep.mubr.f32.mxu0 %v527_v3 }
  0x1a   :  { %503 = vmatpush3.bf16.msra.mxu1 %v502_v58 }
  0x1b   :  { %505 = vmatprep.subr.bf16.mxu1 %v504_v60 }
  0x1c   :  { %415 = vmatmul.mubr.msk.f32.gmra.mrb[4].mxu0 %vm59_vm0, %v702_v59 }
  0x1d   :  { %157 = vmatprep.mubr.f32.mxu0 %v527_v3 }
  0x1e   :  { %507 = vmatpush3.bf16.msra.mxu1 %v506_v1 }
  0x1f   :  { %509 = vmatprep.subr.bf16.mxu1 %v508_v4 }
  0x20   :  { %416 = vmatmul.mubr.msk.f32.gmra.mrb[6].mxu0 %vm59_vm0, %v722_v2 }
  0x21   :  { %163 = vmatprep.mubr.f32.mxu0 %v527_v3  ;;  %v210_v3 = vld [vmem:[%s800_s3 + $0xf0] sm:$0xff] }
  0x22   :  { %511 = vmatpush3.bf16.msra.mxu1 %v510_v8  ;;  %v512_v10 = vpack.c.bf16 %v211_v9, %v210_v3 }
  0x24   :  { %417 = vmatmul.mubr.msk.f32.gmra.mrb[8].mxu0 %vm59_vm0, %v730_v5  ;;  %513 = vmatprep.subr.bf16.mxu1 %v512_v10 }
  0x26   :  { %515 = vmatpush3.bf16.msra.mxu1 %v514_v13 }
  0xe7   :  { %v141_v21 = vpop.f32.mrb[0].mxu0 }
  0xe8   :  { %v142_v22 = vadd.f32 %v141_v21, %v52_v19  ;;  %v143_v23 = vpop.f32.mrb[1].mxu0 }
  0xe9   :  { %v144_v24 = vadd.f32 %v143_v23, %v56_v20 }
  0xea   :  { %v170_v27 = vmax.f32 %v142_v22, 0.0 }
  0xeb   :  { %v147_v25 = vpop.f32.mrb[2].mxu0  ;;  %v171_v26 = vmax.f32 %v144_v24, 0.0 }
  0xec   :  { %v148_v28 = vadd.f32 %v147_v25, %v52_v19  ;;  %v149_v29 = vpop.f32.mrb[3].mxu0 }
  0xed   :  { %v150_v30 = vadd.f32 %v149_v29, %v56_v20  ;;  %283 = vmatprep.mubr.f32.mxu1 %v171_v26 }
  0xee   :  { %284 = vmatmul.mubr.f32.vlgmr.msra.gmra.mrb[0].mxu1 %v170_v27  ;;  %v172_v33 = vmax.f32 %v148_v28, 0.0 }
  0xef   :  { %v173_v31 = vmax.f32 %v150_v30, 0.0  ;;  %v153_v32 = vpop.f32.mrb[4].mxu0 }
  0xf0   :  { %v154_v34 = vadd.f32 %v153_v32, %v52_v19  ;;  %v155_v35 = vpop.f32.mrb[5].mxu0 }
  0xf1   :  { %v156_v36 = vadd.f32 %v155_v35, %v56_v20  ;;  %288 = vmatprep.mubr.f32.mxu1 %v173_v31 }
  0xf2   :  { %289 = vmatmul.mubr.f32.gmra.mrb[2].mxu1 %v172_v33  ;;  %v174_v39 = vmax.f32 %v154_v34, 0.0 }
  0xf3   :  { %v175_v37 = vmax.f32 %v156_v36, 0.0  ;;  %v159_v38 = vpop.f32.mrb[6].mxu0 }
  0xf4   :  { %v160_v40 = vadd.f32 %v159_v38, %v52_v19  ;;  %v161_v41 = vpop.f32.mrb[7].mxu0 }
  0xf5   :  { %v162_v42 = vadd.f32 %v161_v41, %v56_v20  ;;  %293 = vmatprep.mubr.f32.mxu1 %v175_v37 }
  0xf6   :  { %294 = vmatmul.mubr.f32.gmra.mrb[4].mxu1 %v174_v39  ;;  %v176_v46 = vmax.f32 %v160_v40, 0.0 }
  0xf7   :  { %v177_v43 = vmax.f32 %v162_v42, 0.0  ;;  %v165_v44 = vpop.f32.mrb[8].mxu0 }
  0xf8   :  { %v166_v47 = vadd.f32 %v165_v44, %v52_v19  ;;  %v167_v48 = vpop.f32.mrb[9].mxu0 }
  0xf9   :  { %v168_v49 = vadd.f32 %v167_v48, %v56_v20  ;;  %298 = vmatprep.mubr.f32.mxu1 %v177_v43 }
  0xfa   :  { %299 = vmatmul.mubr.f32.gmra.mrb[6].mxu1 %v176_v46  ;;  %v178_v51 = vmax.f32 %v166_v47, 0.0 }
  0xfb   :  { %v179_v50 = vmax.f32 %v168_v49, 0.0 }
  0xfd   :  { %303 = vmatprep.mubr.f32.mxu1 %v179_v50 }
  0xfe   :  { %304 = vmatmul.mubr.f32.gmra.mrb[8].mxu1 %v178_v51 }
 0x1c1   :  { %v453_v53 = vpop.f32.mrb[0].mxu1 }
 0x1c2   :  { %v454_v55 = vpop.f32.mrb[1].mxu1 }
 0x1c3   :  { %v455_v56 = vadd.f32 %v454_v55, %v453_v53 }
 0x1c5   :  { %v286_v57 = vadd.f32 %v455_v56, %v418_v54  ;;  %v456_v58 = vpop.f32.mrb[2].mxu1 }
 0x1c6   :  { %v457_v60 = vpop.f32.mrb[3].mxu1 }
 0x1c7   :  { %v458_v61 = vadd.f32 %v457_v60, %v456_v58  ;;  %v309_v62 = vadd.f32 %v286_v57, %v662_v45  ;;  %v419_v57 = vld [vmem:[%s804_s5] ss:$0 sm:$0xff] }
 0x1c9   :  { %v291_v63 = vadd.f32 %v458_v61, %v418_v54  ;;  %v459_v0 = vpop.f32.mrb[4].mxu1  ;;  %v314_v1 = vsel %vm59_vm0, %v309_v62, 0.0 }
 0x1ca   :  { %v460_v4 = vpop.f32.mrb[5].mxu1  ;;  %315 = vadd.xlane.f32.xlu0 %v314_v1 }
 0x1cb   :  { %v461_v6 = vadd.f32 %v460_v4, %v459_v0  ;;  %v310_v7 = vadd.f32 %v291_v63, %v682_v52 }
 0x1cd   :  { %v296_v8 = vadd.f32 %v461_v6, %v418_v54  ;;  %v462_v3 = vpop.f32.mrb[6].mxu1  ;;  %v317_v9 = vsel %vm59_vm0, %v310_v7, 0.0 }
 0x1ce   :  { %v463_v10 = vpop.f32.mrb[7].mxu1  ;;  %318 = vadd.xlane.f32.xlu0 %v317_v9 }
 0x1cf   :  { %v464_v11 = vadd.f32 %v463_v10, %v462_v3  ;;  %v311_v12 = vadd.f32 %v296_v8, %v702_v59 }
 0x1d1   :  { %v301_v13 = vadd.f32 %v464_v11, %v418_v54  ;;  %v465_v45 = vpop.f32.mrb[8].mxu1  ;;  %v320_v14 = vsel %vm59_vm0, %v311_v12, 0.0 }
 0x1d2   :  { %v466_v15 = vpop.f32.mrb[9].mxu1  ;;  %321 = vadd.xlane.f32.xlu1 %v320_v14 }
 0x1d3   :  { %v467_v16 = vadd.f32 %v466_v15, %v465_v45  ;;  %v312_v17 = vadd.f32 %v301_v13, %v722_v2 }
 0x1d5   :  { %v306_v18 = vadd.f32 %v467_v16, %v418_v54  ;;  %v323_v52 = vsel %vm59_vm0, %v312_v17, 0.0 }
 0x1d6   :  { %324 = vadd.xlane.f32.xlu1 %v323_v52 }
 0x1d7   :  { %v313_v19 = vadd.f32 %v306_v18, %v730_v5 }
 0x1d9   :  { %v326_v20 = vsel %vm59_vm0, %v313_v19, 0.0 }
 0x1da   :  { %327 = vadd.xlane.f32.xlu0 %v326_v20 }
 0x257   :  { %v316_v21 = vpop.xlane.xlu0 %315 }
 0x258   :  { %v330_v59 = vmul.f32 0.015625, %v316_v21 }
 0x25a   :  { %v335_v22 = vsub.f32 %v309_v62, %v330_v59  ;;  %v420_v62 = vld [vmem:[%s805_s6] ss:$0 sm:$0xff] }
 0x25b   :  { %v319_v23 = vpop.xlane.xlu0 %318 }
 0x25c   :  { %v331_v24 = vmul.f32 0.015625, %v319_v23  ;;  %v340_v25 = vmul.f32 %v335_v22, %v335_v22 }
 0x25e   :  { %v336_v26 = vsub.f32 %v310_v7, %v331_v24  ;;  %v345_v27 = vsel %vm59_vm0, %v340_v25, 0.0 }
 0x25f   :  { %v322_v28 = vpop.xlane.xlu1 %321  ;;  %346 = vadd.xlane.f32.xlu1 %v345_v27 }
 0x260   :  { %v332_v2 = vmul.f32 0.015625, %v322_v28  ;;  %v341_v29 = vmul.f32 %v336_v26, %v336_v26 }
 0x262   :  { %v337_v30 = vsub.f32 %v311_v12, %v332_v2  ;;  %v348_v31 = vsel %vm59_vm0, %v341_v29, 0.0 }
 0x263   :  { %v325_v5 = vpop.xlane.xlu1 %324  ;;  %349 = vadd.xlane.f32.xlu0 %v348_v31 }
 0x264   :  { %v333_v32 = vmul.f32 0.015625, %v325_v5  ;;  %v342_v33 = vmul.f32 %v337_v30, %v337_v30 }
 0x266   :  { %v338_v34 = vsub.f32 %v312_v17, %v333_v32  ;;  %v351_v35 = vsel %vm59_vm0, %v342_v33, 0.0 }
 0x267   :  { %352 = vadd.xlane.f32.xlu1 %v351_v35  ;;  %v328_v36 = vpop.xlane.xlu0 %327 }
 0x268   :  { %v334_v37 = vmul.f32 0.015625, %v328_v36  ;;  %v343_v38 = vmul.f32 %v338_v34, %v338_v34 }
 0x26a   :  { %v339_v39 = vsub.f32 %v313_v19, %v334_v37  ;;  %v354_v40 = vsel %vm59_vm0, %v343_v38, 0.0 }
 0x26b   :  { %355 = vadd.xlane.f32.xlu0 %v354_v40 }
 0x26c   :  { %v344_v41 = vmul.f32 %v339_v39, %v339_v39 }
 0x26e   :  { %v357_v42 = vsel %vm59_vm0, %v344_v41, 0.0 }
 0x26f   :  { %358 = vadd.xlane.f32.xlu1 %v357_v42 }
 0x2ec   :  { %v347_v43 = vpop.xlane.xlu1 %346 }
 0x2ed   :  { %v360_v44 = vmul.f32 0.015625, %v347_v43 }
 0x2ef   :  { %v365_v46 = vadd.f32 1e-05, %v360_v44 }
 0x2f0   :  { %v350_v47 = vpop.xlane.xlu0 %349 }
 0x2f1   :  { %517 = vrsqrt.f32 %v365_v46  ;;  %v361_v48 = vmul.f32 0.015625, %v350_v47 }
 0x2f3   :  { %v366_v49 = vadd.f32 1e-05, %v361_v48 }
 0x2f4   :  { %v353_v50 = vpop.xlane.xlu1 %352 }
 0x2f5   :  { %519 = vrsqrt.f32 %v366_v49  ;;  %v362_v51 = vmul.f32 0.015625, %v353_v50 }
 0x2f7   :  { %v367_v53 = vadd.f32 1e-05, %v362_v51 }
 0x2f8   :  { %v356_v54 = vpop.xlane.xlu0 %355 }
 0x2f9   :  { %521 = vrsqrt.f32 %v367_v53  ;;  %v363_v55 = vmul.f32 0.015625, %v356_v54 }
 0x2fb   :  { %v518_v56 = vpop.eup %517  ;;  %v368_v58 = vadd.f32 1e-05, %v363_v55 }
 0x2fc   :  { %v375_v60 = vmul.f32 %v518_v56, %v335_v22  ;;  %v359_v61 = vpop.xlane.xlu1 %358 }
 0x2fd   :  { %523 = vrsqrt.f32 %v368_v58  ;;  %v364_v63 = vmul.f32 0.015625, %v359_v61 }
 0x2fe   :  { %v387_v0 = vmul.f32 %v419_v57, %v375_v60 }
 0x2ff   :  { %v520_v1 = vpop.eup %519  ;;  %v369_v4 = vadd.f32 1e-05, %v364_v63 }
 0x300   :  { %v399_v6 = vadd.f32 %v420_v62, %v387_v0  ;;  %v376_v7 = vmul.f32 %v520_v1, %v336_v26 }
 0x301   :  { %525 = vrsqrt.f32 %v369_v4 }
 0x302   :  { %404 = vst.msk [vmem:[%s806_s7] sm:$0xff] %vm59_vm0, %v399_v6  ;;  %v388_v8 = vmul.f32 %v419_v57, %v376_v7 }
 0x303   :  { %v522_v3 = vpop.eup %521 }
 0x304   :  { %v400_v9 = vadd.f32 %v420_v62, %v388_v8  ;;  %v377_v10 = vmul.f32 %v522_v3, %v337_v30 }
 0x306   :  { %405 = vst.msk [vmem:[%s806_s7 + $0x8] sm:$0xff] %vm59_vm0, %v400_v9  ;;  %v389_v11 = vmul.f32 %v419_v57, %v377_v10 }
 0x307   :  { %v524_v12 = vpop.eup %523 }
 0x308   :  { %v401_v13 = vadd.f32 %v420_v62, %v389_v11  ;;  %v378_v45 = vmul.f32 %v524_v12, %v338_v34 }
 0x30a   :  { %406 = vst.msk [vmem:[%s806_s7 + $0x10] sm:$0xff] %vm59_vm0, %v401_v13  ;;  %v390_v14 = vmul.f32 %v419_v57, %v378_v45 }
 0x30b   :  { %v526_v15 = vpop.eup %525 }
 0x30c   :  { %v402_v16 = vadd.f32 %v420_v62, %v390_v14  ;;  %v379_v17 = vmul.f32 %v526_v15, %v339_v39 }
 0x30e   :  { %407 = vst.msk [vmem:[%s806_s7 + $0x18] sm:$0xff] %vm59_vm0, %v402_v16  ;;  %v391_v18 = vmul.f32 %v419_v57, %v379_v17 }
 0x310   :  { %v403_v52 = vadd.f32 %v420_v62, %v391_v18 }
 0x312   :  { %408 = vst.msk [vmem:[%s806_s7 + $0x20] sm:$0xff] %vm59_vm0, %v403_v52 }

// kernel: vit_forward.19
= control target key start
LH: loop header
LB: loop body
LE: loop exit
PB: predicated region body
PF: predicated region fallthrough
CT: control target
= control target key end

     0   :  { %vm22_vm0 = vcmask 517120   ;;  %s313_s0 = inlined_call_operand.vmem [shape: f32[2,64], index: 0, kind: input, shape index: {}]   ;;  %s314_s1 = inlined_call_operand.vmem [shape: f32[1,64], index: 1, kind: input, shape index: {}]   ;;  %s315_s2 = inlined_call_operand.vmem [shape: f32[1,64], index: 2, kind: input, shape index: {}]   ;;  %s316_s3 = inlined_call_operand.vmem [shape: f32[64,128], index: 3, kind: input, shape index: {}]   ;;  %s317_s4 = inlined_call_operand.vmem [shape: f32[1,128], index: 4, kind: input, shape index: {}]   ;;  %s318_s5 = inlined_call_operand.hbm [shape: f32[2,128], index: 5, kind: output, shape index: {}]  }
   0x1   :  { %v21_v0 = vld [vmem:[%s313_s0] sm:$0x3] }
   0x2   :  { %10 = vsyncpa [#allocation3], 0  ;;  %v23_v1 = vsel %vm22_vm0, %v21_v0, 0.0  ;;  %v53_v7 = vld [vmem:[%s316_s3] sm:$0xff]  ;;  %v54_v8 = vld [vmem:[%s316_s3 + $0x8] sm:$0xff]  ;;  %v231_v12 = vmov 0.0|0.0  }
   0x3   :  { %24 = vadd.xlane.f32.xlu0 %v23_v1  ;;  %v190_v9 = vpack.c.bf16 %v54_v8, %v53_v7  ;;  %v55_v10 = vld [vmem:[%s316_s3 + $0x10] sm:$0xff]  ;;  %v56_v11 = vld [vmem:[%s316_s3 + $0x18] sm:$0xff]  ;;  %189 = vmatprep.subr.bf16.mxu0 %v231_v12  ;;  %vm232_vm1 = vmmov 0   ;;  %v233_v13 = vmov 0.0   ;;  %v57_v15 = vld [vmem:[%s316_s3 + $0x20] sm:$0xff]  ;;  %vm68_vm2 = vcmask 523264  }
   0x4   :  { %186 = vmatprep.mubr.msk.f32.mxu0 %vm232_vm1, %v233_v13  ;;  %v193_v14 = vpack.c.bf16 %v56_v11, %v55_v10  ;;  %v58_v16 = vld [vmem:[%s316_s3 + $0x28] sm:$0xff]  ;;  %v59_v18 = vld [vmem:[%s316_s3 + $0x30] sm:$0xff]  ;;  %v60_v19 = vld [vmem:[%s316_s3 + $0x38] sm:$0xff]  ;;  %s234_s15 = smov [#allocation2]  }
   0x5   :  { %191 = vmatpush3.bf16.msra.mxu0 %v190_v9  ;;  %v196_v17 = vpack.c.bf16 %v58_v16, %v57_v15  ;;  %v199_v20 = vpack.c.bf16 %v60_v19, %v59_v18  ;;  %v157_v25 = vld [vmem:[%s314_s1] ss:$0 sm:$0xff]  ;;  %s149_s16 = sshll.u32 %s234_s15, 4  ;;  %s150_s16 = int_to_ptr.vmem [resolvable:$true] %s149_s16 }
   0x6   :  { %192 = vmatprep.subr.bf16.mxu0 %v231_v12  ;;  %v158_v27 = vld [vmem:[%s315_s2] ss:$0 sm:$0xff]  ;;  %s207_s1 = scalar_lea.vmem %s150_s16, 32  ;;  %p212_p1 = scmp.lt.s32.totalorder %s150_s16, %s150_s16 }
   0x7   :  { %v159_v30 = vld [vmem:[%s317_s4] ss:$0 sm:$0xff]  ;;  %p208_p0 = scmp.ne.s32.totalorder %s150_s16, %s207_s1  ;;  %p213_p2 = scmp.lt.s32.totalorder %s207_s1, %s207_s1 }
   0x9   :  { %194 = vmatpush3.bf16.msra.mxu0 %v193_v14  ;;  %p214_p3 = por %p213_p2, %p212_p1 }
   0xa   :  { %195 = vmatprep.subr.bf16.mxu0 %v231_v12 }
   0xb   :  { %p215_p4 = pnand %p214_p3, %p208_p0 }
   0xd   :  { %197 = vmatpush3.bf16.msra.mxu0 %v196_v17 }
   0xe   :  { %198 = vmatprep.subr.bf16.mxu0 %v231_v12 }
  0x11   :  { %200 = vmatpush3.bf16.msra.mxu0 %v199_v20 }
  0x90   :  { %v25_v2 = vpop.xlane.xlu0 %24 }
  0x91   :  { %v27_v3 = vmul.f32 0.015625, %v25_v2 }
  0x93   :  { %v28_v4 = vsub.f32 %v21_v0, %v27_v3 }
  0x95   :  { %v29_v5 = vmul.f32 %v28_v4, %v28_v4 }
  0x97   :  { %v30_v6 = vsel %vm22_vm0, %v29_v5, 0.0 }
  0x98   :  { %31 = vadd.xlane.f32.xlu0 %v30_v6 }
 0x125   :  { %v32_v21 = vpop.xlane.xlu0 %31 }
 0x126   :  { %v33_v22 = vmul.f32 0.015625, %v32_v21 }
 0x128   :  { %v34_v23 = vadd.f32 1e-05, %v33_v22 }
 0x12a   :  { %205 = vrsqrt.f32 %v34_v23 }
 0x134   :  { %v206_v24 = vpop.eup %205 }
 0x135   :  { %v36_v26 = vmul.f32 %v206_v24, %v28_v4 }
 0x137   :  { %v44_v28 = vmul.f32 %v157_v25, %v36_v26 }
 0x139   :  { %v52_v29 = vadd.f32 %v158_v27, %v44_v28 }
 0x13b   :  { %187 = vmatmul.mubr.msk.f32.vlgmr.msra.gmra.mrb[0].mxu0 %vm68_vm2, %v52_v29 }
 0x20e   :  { %v138_v31 = vpop.f32.mrb[0].mxu0 }
 0x20f   :  { %v139_v32 = vadd.f32 %v159_v30, %v138_v31  ;;  %v188_v33 = vpop.f32.mrb[1].mxu0 }
 0x211   :  { %142 = vst [vmem:[#allocation2] sm:$0x3] %v139_v32 }
 0x212   :  { %218 = shalt.err (!%p215_p4)
}
 0x213   :  { %s219_s18 = scalar_lea.hbm %s318_s5, 32 }
 0x214   :  { %p220_p5 = scmp.ne.s32.totalorder %s318_s5, %s219_s18  ;;  %p223_p6 = scmp.lt.u32.totalorder %s219_s18, %s318_s5 }
 0x216   :  { %p225_p7 = pnand %p223_p6, %p220_p5 }
 0x218   :  { %228 = shalt.err (!%p225_p7)
}
 0x219   :  { %152 = dma.vmem_to_hbm [thread:$0]  %s150_s16, 32, %s318_s5, [#allocation3]  }
 0x21a   :  { %229 = dma.done.wait [#allocation3], 32  }
 0x21b   :  { %230 = vsyncadd [#allocation3], 4294967264 }
 0x21c   :  { %156 = vsyncpa [#allocation3], 1 }

</bundles_post_ra>
